<compile_context>
chip_gen: v7x
topology: tpu7x:2x2x1
jax: 0.10.0
libtpu: 0.0.40
codegen_flags: <defaults>
</compile_context>

<pallas_src>
import functools

import jax
import jax.numpy as jnp
from jax.experimental import pallas as pl
from jax.experimental.pallas import tpu as pltpu


def readout_kernel(x_ref, w1_ref, b1_ref, wih_ref, bg_ref, whh_hbm, w2_ref, b2_ref,
                   out_ref, pre_ref, whh_vmem, dma_sem, *, T, Bp):
    """Single-invocation kernel: batched prologue + unrolled LSTM recurrence + fc2 epilogue.

    x_ref:    (T*Bp, k*F)   bf16, time-major, batch padded to Bp
    whh_hbm:  (H2, 4*H2)    bf16, left in HBM (pl.ANY) and DMA'd manually
    pre_ref:  (T*Bp, 4*H2)  f32 VMEM scratch: non-recurrent gate pre-activations
    out_ref:  (Bp, 128)     f32, lane-dense fc2 output (only column 0 is real)
    """
    H2 = whh_hbm.shape[0]

    # Kick off the W_hh HBM->VMEM copy now; it is only needed after the prologue,
    # so its transfer hides behind the two prologue matmuls.
    whh_copy = pltpu.make_async_copy(whh_hbm, whh_vmem, dma_sem)
    whh_copy.start()

    # ---- Prologue (all timesteps at once; off the serial chain) -------------------------
    # fc1 (block-diagonal over the k feature groups) + ReLU, then the input projection of
    # the LSTM, with both biases folded in.  bf16 MXU operands, f32 accumulation.
    z = jnp.maximum(
        jnp.dot(x_ref[...], w1_ref[...], preferred_element_type=jnp.float32) + b1_ref[...],
        0.0)                                                          # (T*Bp, k*H1) f32
    pre_ref[...] = (jnp.dot(z.astype(jnp.bfloat16), wih_ref[...],
                            preferred_element_type=jnp.float32)
                    + bg_ref[...])                                    # (T*Bp, 4*H2) f32

    whh_copy.wait()
    whh = whh_vmem[...]                                               # (H2, 4*H2) bf16

    # ---- Recurrence (serial; only h @ W_hh^T + gate nonlinearities per step) ------------
    # The 0.5 of sigmoid(x) = 0.5*(1 + tanh(x/2)) was folded into the i/f/o columns of
    # W_ih / W_hh / bias at param-build time, so a single tanh over all 4 gate blocks
    # suffices; i/f/o are recovered with a cheap VPU affine.
    h = jnp.zeros((Bp, H2), jnp.float32)
    c = jnp.zeros((Bp, H2), jnp.float32)
    for t in range(T):                       # static unroll (T is small and static)
        gates = (pre_ref[pl.ds(t * Bp, Bp), :]
                 + jnp.dot(h.astype(jnp.bfloat16), whh,
                           preferred_element_type=jnp.float32))       # (Bp, 4*H2) f32
        t_all = jnp.tanh(gates)                                       # one streamed tanh
        i_g = 0.5 * t_all[:, 0 * H2:1 * H2] + 0.5
        f_g = 0.5 * t_all[:, 1 * H2:2 * H2] + 0.5
        g_g = t_all[:, 2 * H2:3 * H2]
        o_g = 0.5 * t_all[:, 3 * H2:4 * H2] + 0.5
        c = f_g * c + i_g * g_g
        h = o_g * jnp.tanh(c)

    # ---- Epilogue: fc2 on the last timestep's hidden state (lane-dense, unmasked vst) ---
    out_ref[...] = (jnp.dot(h, w2_ref[...], preferred_element_type=jnp.float32)
                    + b2_ref[...])


@functools.partial(jax.jit, static_argnames=("k",))
def value_net_forward(x, params, *, k):
    """x: (B, T, k, F) float32 -> (B, 1) float32."""
    B, T, kk, F = x.shape
    assert kk == k
    w1bd, b1t, wih_t, bg, whh_t, w2pad, b2pad = params
    H2 = whh_t.shape[0]
    kF = k * F

    # Pad batch up to a full f32 sublane tile.
    Bp = max(8, ((B + 7) // 8) * 8)

    # Time-major, feature groups flattened, batch zero-padded, then flattened to (T*Bp, kF)
    # so the prologue is one big batched matmul.  Cast to bf16 for the MXU.
    x_tm = jnp.transpose(x, (1, 0, 2, 3)).reshape(T, B, kF)
    x_tm = jnp.pad(x_tm, ((0, 0), (0, Bp - B), (0, 0)))
    x_flat = x_tm.reshape(T * Bp, kF).astype(jnp.bfloat16)

    vmem = pltpu.MemorySpace.VMEM
    out = pl.pallas_call(
        functools.partial(readout_kernel, T=T, Bp=Bp),
        out_shape=jax.ShapeDtypeStruct((Bp, 128), jnp.float32),
        in_specs=[
            pl.BlockSpec(memory_space=vmem),    # x_flat
            pl.BlockSpec(memory_space=vmem),    # w1bd (block-diag fc1, bf16)
            pl.BlockSpec(memory_space=vmem),    # b1   (f32)
            pl.BlockSpec(memory_space=vmem),    # W_ih^T (bf16, 0.5-folded)
            pl.BlockSpec(memory_space=vmem),    # gate bias (f32, 0.5-folded)
            pl.BlockSpec(memory_space=pl.ANY),  # W_hh^T stays in HBM; manual overlapped DMA
            pl.BlockSpec(memory_space=vmem),    # fc2 weight, lane-padded (f32)
            pl.BlockSpec(memory_space=vmem),    # fc2 bias, lane-padded (f32)
        ],
        out_specs=pl.BlockSpec(memory_space=vmem),
        scratch_shapes=[
            pltpu.VMEM((T * Bp, 4 * H2), jnp.float32),   # pre-activations for all timesteps
            pltpu.VMEM((H2, 4 * H2), jnp.bfloat16),      # W_hh landing buffer
            pltpu.SemaphoreType.DMA(()),                 # DMA completion semaphore
        ],
    )(x_flat, w1bd, b1t, wih_t, bg, whh_t, w2pad, b2pad)
    return out[:B, :1]


def make_params(key, *, feature_size=32, k=5, hidden_dim1=8, hidden_dim2=128, out_dim=1):
    """Deterministic synthetic parameters (PyTorch-style shapes, uniform init)."""
    ks = jax.random.split(key, 8)
    u = lambda kk, shape, bound: jax.random.uniform(kk, shape, jnp.float32, -bound, bound)

    # fc1: (out=H1, in=F)
    w1 = u(ks[0], (hidden_dim1, feature_size), 1.0 / jnp.sqrt(feature_size))
    b1 = u(ks[1], (hidden_dim1,), 1.0 / jnp.sqrt(feature_size))
    # lstm: W_ih (4*H2, k*H1), W_hh (4*H2, H2), b_ih/b_hh (4*H2,)  gate order [i,f,g,o]
    in_sz = hidden_dim1 * k
    bh = 1.0 / jnp.sqrt(hidden_dim2)
    w_ih = u(ks[2], (4 * hidden_dim2, in_sz), bh)
    w_hh = u(ks[3], (4 * hidden_dim2, hidden_dim2), bh)
    b_ih = u(ks[4], (4 * hidden_dim2,), bh)
    b_hh = u(ks[5], (4 * hidden_dim2,), bh)
    # fc2: (out_dim, H2)
    w2 = u(ks[6], (out_dim, hidden_dim2), bh)
    b2 = u(ks[7], (out_dim,), bh)

    raw = dict(w1=w1, b1=b1, w_ih=w_ih, w_hh=w_hh, b_ih=b_ih, b_hh=b_hh, w2=w2, b2=b2)

    # sigmoid(x) = 0.5*(1 + tanh(x/2)): fold the 1/2 into the i/f/o gate column blocks so
    # the kernel can run a single contiguous tanh over all 4 gate blocks.
    H2 = hidden_dim2
    gate_scale = jnp.concatenate([
        jnp.full((H2,), 0.5), jnp.full((H2,), 0.5),
        jnp.ones((H2,)), jnp.full((H2,), 0.5)]).astype(jnp.float32)          # (4*H2,)

    # kernel-ready forms (bf16 for MXU operands; biases / fc2 stay f32)
    w1bd = jax.scipy.linalg.block_diag(*([w1.T] * k)).astype(jnp.bfloat16)   # (k*F, k*H1)
    b1t = jnp.tile(b1, (k,))[None, :]                                        # (1, k*H1)
    wih_t = (w_ih.T * gate_scale[None, :]).astype(jnp.bfloat16)              # (k*H1, 4*H2)
    whh_t = (w_hh.T * gate_scale[None, :]).astype(jnp.bfloat16)              # (H2, 4*H2)
    bg = ((b_ih + b_hh) * gate_scale)[None, :]                               # (1, 4*H2)
    w2pad = jnp.zeros((hidden_dim2, 128), jnp.float32).at[:, :out_dim].set(w2.T)
    b2pad = jnp.zeros((1, 128), jnp.float32).at[0, :out_dim].set(b2)
    kernel_params = (w1bd, b1t, wih_t, bg, whh_t, w2pad, b2pad)
    return raw, kernel_params


def reference_forward(x, raw, *, k):
    """Pure-JAX f32 reference of the intended Readout forward."""
    B, T, kk, F = x.shape
    h1 = jnp.maximum(jnp.einsum("btkf,hf->btkh", x, raw["w1"]) + raw["b1"], 0.0)
    z = h1.reshape(B, T, kk * raw["w1"].shape[0])                # (B, T, k*H1)
    H2 = raw["w_hh"].shape[1]

    def step(carry, z_t):
        h, c = carry
        gates = z_t @ raw["w_ih"].T + h @ raw["w_hh"].T + raw["b_ih"] + raw["b_hh"]
        i_g = jax.nn.sigmoid(gates[:, 0 * H2:1 * H2])
        f_g = jax.nn.sigmoid(gates[:, 1 * H2:2 * H2])
        g_g = jnp.tanh(gates[:, 2 * H2:3 * H2])
        o_g = jax.nn.sigmoid(gates[:, 3 * H2:4 * H2])
        c = f_g * c + i_g * g_g
        h = o_g * jnp.tanh(c)
        return (h, c), None

    h0 = jnp.zeros((B, H2), jnp.float32)
    (h_last, _), _ = jax.lax.scan(step, (h0, h0), jnp.transpose(z, (1, 0, 2)))
    return h_last @ raw["w2"].T + raw["b2"]


if __name__ == "__main__":
    B, T, K, F = 2, 8, 5, 32
    key = jax.random.PRNGKey(0)
    kx, kp = jax.random.split(key)
    x = jax.random.normal(kx, (B, T, K, F), jnp.float32)

    raw, kernel_params = make_params(kp, feature_size=F, k=K)

    out = value_net_forward(x, kernel_params, k=K)
    out = jax.block_until_ready(out)

    ref = reference_forward(x, raw, k=K)
    assert out.shape == (B, 1), out.shape
    # NOTE: tolerance is load-bearing — the kernel feeds the MXU bf16 operands (f32 accumulate),
    # so it differs from the pure-f32 reference at roughly the 1e-3 level.
    assert jnp.allclose(out, ref, rtol=5e-3, atol=3e-3), (out, ref)

    print("KERNEL_OK")
</pallas_src>

<mosaic_0001>
module attributes {stable_mosaic.version = 11 : i64} {
  func.func @readout_kernel(%arg0: memref<64x160xbf16, #tpu.memory_space<vmem>>, %arg1: memref<160x40xbf16, #tpu.memory_space<vmem>>, %arg2: memref<1x40xf32, #tpu.memory_space<vmem>>, %arg3: memref<40x512xbf16, #tpu.memory_space<vmem>>, %arg4: memref<1x512xf32, #tpu.memory_space<vmem>>, %arg5: memref<128x512xbf16, #tpu.memory_space<any>>, %arg6: memref<128x128xf32, #tpu.memory_space<vmem>>, %arg7: memref<1x128xf32, #tpu.memory_space<vmem>>, %arg8: memref<8x128xf32, #tpu.memory_space<vmem>>, %arg9: memref<64x512xf32, #tpu.memory_space<vmem>>, %arg10: memref<128x512xbf16, #tpu.memory_space<vmem>>, %arg11: memref<!tpu.dma_semaphore, #tpu.memory_space<semaphore_mem>>) attributes {dimension_semantics = [], scalar_prefetch = 0 : i64, scratch_operands = 3 : i64, tpu.core_type = #tpu.core_type<tc>} {
    tpu.enqueue_dma source(%arg5 : memref<128x512xbf16, #tpu.memory_space<any>>) target(%arg10 : memref<128x512xbf16, #tpu.memory_space<vmem>>) target_semaphore(%arg11 : memref<!tpu.dma_semaphore, #tpu.memory_space<semaphore_mem>>)
    %c0 = arith.constant 0 : index
    %c0_0 = arith.constant 0 : index
    %0 = vector.load %arg0[%c0, %c0_0] : memref<64x160xbf16, #tpu.memory_space<vmem>>, vector<64x160xbf16>
    %c0_1 = arith.constant 0 : index
    %c0_2 = arith.constant 0 : index
    %1 = vector.load %arg1[%c0_1, %c0_2] : memref<160x40xbf16, #tpu.memory_space<vmem>>, vector<160x40xbf16>
    %cst = arith.constant dense<0.000000e+00> : vector<64x40xf32>
    %2 = tpu.matmul %0, %1, %cst {dimension_numbers = #tpu.dot_dimension_numbers<[1], [0], [0], [1], [0, 0, 1, 1], [], []>} : vector<64x160xbf16>, vector<160x40xbf16>, vector<64x40xf32> -> vector<64x40xf32>
    %c0_3 = arith.constant 0 : index
    %c0_4 = arith.constant 0 : index
    %3 = vector.load %arg2[%c0_3, %c0_4] : memref<1x40xf32, #tpu.memory_space<vmem>>, vector<1x40xf32>
    %4 = vector.broadcast %3 : vector<1x40xf32> to vector<64x40xf32>
    %5 = arith.addf %2, %4 : vector<64x40xf32>
    %cst_5 = arith.constant 0.000000e+00 : f32
    %6 = vector.broadcast %cst_5 : f32 to vector<64x40xf32>
    %7 = arith.maximumf %5, %6 : vector<64x40xf32>
    %8 = arith.truncf %7 : vector<64x40xf32> to vector<64x40xbf16>
    %c0_6 = arith.constant 0 : index
    %c0_7 = arith.constant 0 : index
    %9 = vector.load %arg3[%c0_6, %c0_7] : memref<40x512xbf16, #tpu.memory_space<vmem>>, vector<40x512xbf16>
    %cst_8 = arith.constant dense<0.000000e+00> : vector<64x512xf32>
    %10 = tpu.matmul %8, %9, %cst_8 {dimension_numbers = #tpu.dot_dimension_numbers<[1], [0], [0], [1], [0, 0, 1, 1], [], []>} : vector<64x40xbf16>, vector<40x512xbf16>, vector<64x512xf32> -> vector<64x512xf32>
    %c0_9 = arith.constant 0 : index
    %c0_10 = arith.constant 0 : index
    %11 = vector.load %arg4[%c0_9, %c0_10] : memref<1x512xf32, #tpu.memory_space<vmem>>, vector<1x512xf32>
    %12 = vector.broadcast %11 : vector<1x512xf32> to vector<64x512xf32>
    %13 = arith.addf %10, %12 : vector<64x512xf32>
    %c0_11 = arith.constant 0 : index
    %c0_12 = arith.constant 0 : index
    %14 = vector.load %arg9[%c0_11, %c0_12] : memref<64x512xf32, #tpu.memory_space<vmem>>, vector<64x512xf32>
    tpu.vector_store %arg9[%c0_11, %c0_12], %13 {strides = array<i32>} : memref<64x512xf32, #tpu.memory_space<vmem>>, vector<64x512xf32>,
    tpu.wait_dma2 semaphore(%arg11 : memref<!tpu.dma_semaphore, #tpu.memory_space<semaphore_mem>>) src(%arg5 : memref<128x512xbf16, #tpu.memory_space<any>>) dst(%arg10 : memref<128x512xbf16, #tpu.memory_space<vmem>>)
    %c0_13 = arith.constant 0 : index
    %c0_14 = arith.constant 0 : index
    %15 = vector.load %arg10[%c0_13, %c0_14] : memref<128x512xbf16, #tpu.memory_space<vmem>>, vector<128x512xbf16>
    %cst_15 = arith.constant 0.000000e+00 : f32
    %16 = vector.broadcast %cst_15 : f32 to vector<8x128xf32>
    %cst_16 = arith.constant 0.000000e+00 : f32
    %17 = vector.broadcast %cst_16 : f32 to vector<8x128xf32>
    %c0_17 = arith.constant 0 : index
    %c0_18 = arith.constant 0 : index
    %18 = vector.load %arg9[%c0_17, %c0_18] : memref<64x512xf32, #tpu.memory_space<vmem>>, vector<8x512xf32>
    %19 = arith.truncf %16 : vector<8x128xf32> to vector<8x128xbf16>
    %cst_19 = arith.constant dense<0.000000e+00> : vector<8x512xf32>
    %20 = tpu.matmul %19, %15, %cst_19 {dimension_numbers = #tpu.dot_dimension_numbers<[1], [0], [0], [1], [0, 0, 1, 1], [], []>} : vector<8x128xbf16>, vector<128x512xbf16>, vector<8x512xf32> -> vector<8x512xf32>
    %21 = arith.addf %18, %20 : vector<8x512xf32>
    %22 = math.tanh %21 : vector<8x512xf32>
    %23 = vector.extract_strided_slice %22 {offsets = [0, 0], sizes = [8, 128], strides = [1, 1]} : vector<8x512xf32> to vector<8x128xf32>
    %cst_20 = arith.constant 5.000000e-01 : f32
    %24 = vector.broadcast %cst_20 : f32 to vector<8x128xf32>
    %25 = arith.mulf %24, %23 : vector<8x128xf32>
    %cst_21 = arith.constant 5.000000e-01 : f32
    %26 = vector.broadcast %cst_21 : f32 to vector<8x128xf32>
    %27 = arith.addf %25, %26 : vector<8x128xf32>
    %28 = vector.extract_strided_slice %22 {offsets = [0, 128], sizes = [8, 128], strides = [1, 1]} : vector<8x512xf32> to vector<8x128xf32>
    %cst_22 = arith.constant 5.000000e-01 : f32
    %29 = vector.broadcast %cst_22 : f32 to vector<8x128xf32>
    %30 = arith.mulf %29, %28 : vector<8x128xf32>
    %cst_23 = arith.constant 5.000000e-01 : f32
    %31 = vector.broadcast %cst_23 : f32 to vector<8x128xf32>
    %32 = arith.addf %30, %31 : vector<8x128xf32>
    %33 = vector.extract_strided_slice %22 {offsets = [0, 256], sizes = [8, 128], strides = [1, 1]} : vector<8x512xf32> to vector<8x128xf32>
    %34 = vector.extract_strided_slice %22 {offsets = [0, 384], sizes = [8, 128], strides = [1, 1]} : vector<8x512xf32> to vector<8x128xf32>
    %cst_24 = arith.constant 5.000000e-01 : f32
    %35 = vector.broadcast %cst_24 : f32 to vector<8x128xf32>
    %36 = arith.mulf %35, %34 : vector<8x128xf32>
    %cst_25 = arith.constant 5.000000e-01 : f32
    %37 = vector.broadcast %cst_25 : f32 to vector<8x128xf32>
    %38 = arith.addf %36, %37 : vector<8x128xf32>
    %39 = arith.mulf %32, %17 : vector<8x128xf32>
    %40 = arith.mulf %27, %33 : vector<8x128xf32>
    %41 = arith.addf %39, %40 : vector<8x128xf32>
    %42 = math.tanh %41 : vector<8x128xf32>
    %43 = arith.mulf %38, %42 : vector<8x128xf32>
    %c8 = arith.constant 8 : index
    %c0_26 = arith.constant 0 : index
    %44 = vector.load %arg9[%c8, %c0_26] : memref<64x512xf32, #tpu.memory_space<vmem>>, vector<8x512xf32>
    %45 = arith.truncf %43 : vector<8x128xf32> to vector<8x128xbf16>
    %cst_27 = arith.constant dense<0.000000e+00> : vector<8x512xf32>
    %46 = tpu.matmul %45, %15, %cst_27 {dimension_numbers = #tpu.dot_dimension_numbers<[1], [0], [0], [1], [0, 0, 1, 1], [], []>} : vector<8x128xbf16>, vector<128x512xbf16>, vector<8x512xf32> -> vector<8x512xf32>
    %47 = arith.addf %44, %46 : vector<8x512xf32>
    %48 = math.tanh %47 : vector<8x512xf32>
    %49 = vector.extract_strided_slice %48 {offsets = [0, 0], sizes = [8, 128], strides = [1, 1]} : vector<8x512xf32> to vector<8x128xf32>
    %cst_28 = arith.constant 5.000000e-01 : f32
    %50 = vector.broadcast %cst_28 : f32 to vector<8x128xf32>
    %51 = arith.mulf %50, %49 : vector<8x128xf32>
    %cst_29 = arith.constant 5.000000e-01 : f32
    %52 = vector.broadcast %cst_29 : f32 to vector<8x128xf32>
    %53 = arith.addf %51, %52 : vector<8x128xf32>
    %54 = vector.extract_strided_slice %48 {offsets = [0, 128], sizes = [8, 128], strides = [1, 1]} : vector<8x512xf32> to vector<8x128xf32>
    %cst_30 = arith.constant 5.000000e-01 : f32
    %55 = vector.broadcast %cst_30 : f32 to vector<8x128xf32>
    %56 = arith.mulf %55, %54 : vector<8x128xf32>
    %cst_31 = arith.constant 5.000000e-01 : f32
    %57 = vector.broadcast %cst_31 : f32 to vector<8x128xf32>
    %58 = arith.addf %56, %57 : vector<8x128xf32>
    %59 = vector.extract_strided_slice %48 {offsets = [0, 256], sizes = [8, 128], strides = [1, 1]} : vector<8x512xf32> to vector<8x128xf32>
    %60 = vector.extract_strided_slice %48 {offsets = [0, 384], sizes = [8, 128], strides = [1, 1]} : vector<8x512xf32> to vector<8x128xf32>
    %cst_32 = arith.constant 5.000000e-01 : f32
    %61 = vector.broadcast %cst_32 : f32 to vector<8x128xf32>
    %62 = arith.mulf %61, %60 : vector<8x128xf32>
    %cst_33 = arith.constant 5.000000e-01 : f32
    %63 = vector.broadcast %cst_33 : f32 to vector<8x128xf32>
    %64 = arith.addf %62, %63 : vector<8x128xf32>
    %65 = arith.mulf %58, %41 : vector<8x128xf32>
    %66 = arith.mulf %53, %59 : vector<8x128xf32>
    %67 = arith.addf %65, %66 : vector<8x128xf32>
    %68 = math.tanh %67 : vector<8x128xf32>
    %69 = arith.mulf %64, %68 : vector<8x128xf32>
    %c16 = arith.constant 16 : index
    %c0_34 = arith.constant 0 : index
    %70 = vector.load %arg9[%c16, %c0_34] : memref<64x512xf32, #tpu.memory_space<vmem>>, vector<8x512xf32>
    %71 = arith.truncf %69 : vector<8x128xf32> to vector<8x128xbf16>
    %cst_35 = arith.constant dense<0.000000e+00> : vector<8x512xf32>
    %72 = tpu.matmul %71, %15, %cst_35 {dimension_numbers = #tpu.dot_dimension_numbers<[1], [0], [0], [1], [0, 0, 1, 1], [], []>} : vector<8x128xbf16>, vector<128x512xbf16>, vector<8x512xf32> -> vector<8x512xf32>
    %73 = arith.addf %70, %72 : vector<8x512xf32>
    %74 = math.tanh %73 : vector<8x512xf32>
    %75 = vector.extract_strided_slice %74 {offsets = [0, 0], sizes = [8, 128], strides = [1, 1]} : vector<8x512xf32> to vector<8x128xf32>
    %cst_36 = arith.constant 5.000000e-01 : f32
    %76 = vector.broadcast %cst_36 : f32 to vector<8x128xf32>
    %77 = arith.mulf %76, %75 : vector<8x128xf32>
    %cst_37 = arith.constant 5.000000e-01 : f32
    %78 = vector.broadcast %cst_37 : f32 to vector<8x128xf32>
    %79 = arith.addf %77, %78 : vector<8x128xf32>
    %80 = vector.extract_strided_slice %74 {offsets = [0, 128], sizes = [8, 128], strides = [1, 1]} : vector<8x512xf32> to vector<8x128xf32>
    %cst_38 = arith.constant 5.000000e-01 : f32
    %81 = vector.broadcast %cst_38 : f32 to vector<8x128xf32>
    %82 = arith.mulf %81, %80 : vector<8x128xf32>
    %cst_39 = arith.constant 5.000000e-01 : f32
    %83 = vector.broadcast %cst_39 : f32 to vector<8x128xf32>
    %84 = arith.addf %82, %83 : vector<8x128xf32>
    %85 = vector.extract_strided_slice %74 {offsets = [0, 256], sizes = [8, 128], strides = [1, 1]} : vector<8x512xf32> to vector<8x128xf32>
    %86 = vector.extract_strided_slice %74 {offsets = [0, 384], sizes = [8, 128], strides = [1, 1]} : vector<8x512xf32> to vector<8x128xf32>
    %cst_40 = arith.constant 5.000000e-01 : f32
    %87 = vector.broadcast %cst_40 : f32 to vector<8x128xf32>
    %88 = arith.mulf %87, %86 : vector<8x128xf32>
    %cst_41 = arith.constant 5.000000e-01 : f32
    %89 = vector.broadcast %cst_41 : f32 to vector<8x128xf32>
    %90 = arith.addf %88, %89 : vector<8x128xf32>
    %91 = arith.mulf %84, %67 : vector<8x128xf32>
    %92 = arith.mulf %79, %85 : vector<8x128xf32>
    %93 = arith.addf %91, %92 : vector<8x128xf32>
    %94 = math.tanh %93 : vector<8x128xf32>
    %95 = arith.mulf %90, %94 : vector<8x128xf32>
    %c24 = arith.constant 24 : index
    %c0_42 = arith.constant 0 : index
    %96 = vector.load %arg9[%c24, %c0_42] : memref<64x512xf32, #tpu.memory_space<vmem>>, vector<8x512xf32>
    %97 = arith.truncf %95 : vector<8x128xf32> to vector<8x128xbf16>
    %cst_43 = arith.constant dense<0.000000e+00> : vector<8x512xf32>
    %98 = tpu.matmul %97, %15, %cst_43 {dimension_numbers = #tpu.dot_dimension_numbers<[1], [0], [0], [1], [0, 0, 1, 1], [], []>} : vector<8x128xbf16>, vector<128x512xbf16>, vector<8x512xf32> -> vector<8x512xf32>
    %99 = arith.addf %96, %98 : vector<8x512xf32>
    %100 = math.tanh %99 : vector<8x512xf32>
    %101 = vector.extract_strided_slice %100 {offsets = [0, 0], sizes = [8, 128], strides = [1, 1]} : vector<8x512xf32> to vector<8x128xf32>
    %cst_44 = arith.constant 5.000000e-01 : f32
    %102 = vector.broadcast %cst_44 : f32 to vector<8x128xf32>
    %103 = arith.mulf %102, %101 : vector<8x128xf32>
    %cst_45 = arith.constant 5.000000e-01 : f32
    %104 = vector.broadcast %cst_45 : f32 to vector<8x128xf32>
    %105 = arith.addf %103, %104 : vector<8x128xf32>
    %106 = vector.extract_strided_slice %100 {offsets = [0, 128], sizes = [8, 128], strides = [1, 1]} : vector<8x512xf32> to vector<8x128xf32>
    %cst_46 = arith.constant 5.000000e-01 : f32
    %107 = vector.broadcast %cst_46 : f32 to vector<8x128xf32>
    %108 = arith.mulf %107, %106 : vector<8x128xf32>
    %cst_47 = arith.constant 5.000000e-01 : f32
    %109 = vector.broadcast %cst_47 : f32 to vector<8x128xf32>
    %110 = arith.addf %108, %109 : vector<8x128xf32>
    %111 = vector.extract_strided_slice %100 {offsets = [0, 256], sizes = [8, 128], strides = [1, 1]} : vector<8x512xf32> to vector<8x128xf32>
    %112 = vector.extract_strided_slice %100 {offsets = [0, 384], sizes = [8, 128], strides = [1, 1]} : vector<8x512xf32> to vector<8x128xf32>
    %cst_48 = arith.constant 5.000000e-01 : f32
    %113 = vector.broadcast %cst_48 : f32 to vector<8x128xf32>
    %114 = arith.mulf %113, %112 : vector<8x128xf32>
    %cst_49 = arith.constant 5.000000e-01 : f32
    %115 = vector.broadcast %cst_49 : f32 to vector<8x128xf32>
    %116 = arith.addf %114, %115 : vector<8x128xf32>
    %117 = arith.mulf %110, %93 : vector<8x128xf32>
    %118 = arith.mulf %105, %111 : vector<8x128xf32>
    %119 = arith.addf %117, %118 : vector<8x128xf32>
    %120 = math.tanh %119 : vector<8x128xf32>
    %121 = arith.mulf %116, %120 : vector<8x128xf32>
    %c32 = arith.constant 32 : index
    %c0_50 = arith.constant 0 : index
    %122 = vector.load %arg9[%c32, %c0_50] : memref<64x512xf32, #tpu.memory_space<vmem>>, vector<8x512xf32>
    %123 = arith.truncf %121 : vector<8x128xf32> to vector<8x128xbf16>
    %cst_51 = arith.constant dense<0.000000e+00> : vector<8x512xf32>
    %124 = tpu.matmul %123, %15, %cst_51 {dimension_numbers = #tpu.dot_dimension_numbers<[1], [0], [0], [1], [0, 0, 1, 1], [], []>} : vector<8x128xbf16>, vector<128x512xbf16>, vector<8x512xf32> -> vector<8x512xf32>
    %125 = arith.addf %122, %124 : vector<8x512xf32>
    %126 = math.tanh %125 : vector<8x512xf32>
    %127 = vector.extract_strided_slice %126 {offsets = [0, 0], sizes = [8, 128], strides = [1, 1]} : vector<8x512xf32> to vector<8x128xf32>
    %cst_52 = arith.constant 5.000000e-01 : f32
    %128 = vector.broadcast %cst_52 : f32 to vector<8x128xf32>
    %129 = arith.mulf %128, %127 : vector<8x128xf32>
    %cst_53 = arith.constant 5.000000e-01 : f32
    %130 = vector.broadcast %cst_53 : f32 to vector<8x128xf32>
    %131 = arith.addf %129, %130 : vector<8x128xf32>
    %132 = vector.extract_strided_slice %126 {offsets = [0, 128], sizes = [8, 128], strides = [1, 1]} : vector<8x512xf32> to vector<8x128xf32>
    %cst_54 = arith.constant 5.000000e-01 : f32
    %133 = vector.broadcast %cst_54 : f32 to vector<8x128xf32>
    %134 = arith.mulf %133, %132 : vector<8x128xf32>
    %cst_55 = arith.constant 5.000000e-01 : f32
    %135 = vector.broadcast %cst_55 : f32 to vector<8x128xf32>
    %136 = arith.addf %134, %135 : vector<8x128xf32>
    %137 = vector.extract_strided_slice %126 {offsets = [0, 256], sizes = [8, 128], strides = [1, 1]} : vector<8x512xf32> to vector<8x128xf32>
    %138 = vector.extract_strided_slice %126 {offsets = [0, 384], sizes = [8, 128], strides = [1, 1]} : vector<8x512xf32> to vector<8x128xf32>
    %cst_56 = arith.constant 5.000000e-01 : f32
    %139 = vector.broadcast %cst_56 : f32 to vector<8x128xf32>
    %140 = arith.mulf %139, %138 : vector<8x128xf32>
    %cst_57 = arith.constant 5.000000e-01 : f32
    %141 = vector.broadcast %cst_57 : f32 to vector<8x128xf32>
    %142 = arith.addf %140, %141 : vector<8x128xf32>
    %143 = arith.mulf %136, %119 : vector<8x128xf32>
    %144 = arith.mulf %131, %137 : vector<8x128xf32>
    %145 = arith.addf %143, %144 : vector<8x128xf32>
    %146 = math.tanh %145 : vector<8x128xf32>
    %147 = arith.mulf %142, %146 : vector<8x128xf32>
    %c40 = arith.constant 40 : index
    %c0_58 = arith.constant 0 : index
    %148 = vector.load %arg9[%c40, %c0_58] : memref<64x512xf32, #tpu.memory_space<vmem>>, vector<8x512xf32>
    %149 = arith.truncf %147 : vector<8x128xf32> to vector<8x128xbf16>
    %cst_59 = arith.constant dense<0.000000e+00> : vector<8x512xf32>
    %150 = tpu.matmul %149, %15, %cst_59 {dimension_numbers = #tpu.dot_dimension_numbers<[1], [0], [0], [1], [0, 0, 1, 1], [], []>} : vector<8x128xbf16>, vector<128x512xbf16>, vector<8x512xf32> -> vector<8x512xf32>
    %151 = arith.addf %148, %150 : vector<8x512xf32>
    %152 = math.tanh %151 : vector<8x512xf32>
    %153 = vector.extract_strided_slice %152 {offsets = [0, 0], sizes = [8, 128], strides = [1, 1]} : vector<8x512xf32> to vector<8x128xf32>
    %cst_60 = arith.constant 5.000000e-01 : f32
    %154 = vector.broadcast %cst_60 : f32 to vector<8x128xf32>
    %155 = arith.mulf %154, %153 : vector<8x128xf32>
    %cst_61 = arith.constant 5.000000e-01 : f32
    %156 = vector.broadcast %cst_61 : f32 to vector<8x128xf32>
    %157 = arith.addf %155, %156 : vector<8x128xf32>
    %158 = vector.extract_strided_slice %152 {offsets = [0, 128], sizes = [8, 128], strides = [1, 1]} : vector<8x512xf32> to vector<8x128xf32>
    %cst_62 = arith.constant 5.000000e-01 : f32
    %159 = vector.broadcast %cst_62 : f32 to vector<8x128xf32>
    %160 = arith.mulf %159, %158 : vector<8x128xf32>
    %cst_63 = arith.constant 5.000000e-01 : f32
    %161 = vector.broadcast %cst_63 : f32 to vector<8x128xf32>
    %162 = arith.addf %160, %161 : vector<8x128xf32>
    %163 = vector.extract_strided_slice %152 {offsets = [0, 256], sizes = [8, 128], strides = [1, 1]} : vector<8x512xf32> to vector<8x128xf32>
    %164 = vector.extract_strided_slice %152 {offsets = [0, 384], sizes = [8, 128], strides = [1, 1]} : vector<8x512xf32> to vector<8x128xf32>
    %cst_64 = arith.constant 5.000000e-01 : f32
    %165 = vector.broadcast %cst_64 : f32 to vector<8x128xf32>
    %166 = arith.mulf %165, %164 : vector<8x128xf32>
    %cst_65 = arith.constant 5.000000e-01 : f32
    %167 = vector.broadcast %cst_65 : f32 to vector<8x128xf32>
    %168 = arith.addf %166, %167 : vector<8x128xf32>
    %169 = arith.mulf %162, %145 : vector<8x128xf32>
    %170 = arith.mulf %157, %163 : vector<8x128xf32>
    %171 = arith.addf %169, %170 : vector<8x128xf32>
    %172 = math.tanh %171 : vector<8x128xf32>
    %173 = arith.mulf %168, %172 : vector<8x128xf32>
    %c48 = arith.constant 48 : index
    %c0_66 = arith.constant 0 : index
    %174 = vector.load %arg9[%c48, %c0_66] : memref<64x512xf32, #tpu.memory_space<vmem>>, vector<8x512xf32>
    %175 = arith.truncf %173 : vector<8x128xf32> to vector<8x128xbf16>
    %cst_67 = arith.constant dense<0.000000e+00> : vector<8x512xf32>
    %176 = tpu.matmul %175, %15, %cst_67 {dimension_numbers = #tpu.dot_dimension_numbers<[1], [0], [0], [1], [0, 0, 1, 1], [], []>} : vector<8x128xbf16>, vector<128x512xbf16>, vector<8x512xf32> -> vector<8x512xf32>
    %177 = arith.addf %174, %176 : vector<8x512xf32>
    %178 = math.tanh %177 : vector<8x512xf32>
    %179 = vector.extract_strided_slice %178 {offsets = [0, 0], sizes = [8, 128], strides = [1, 1]} : vector<8x512xf32> to vector<8x128xf32>
    %cst_68 = arith.constant 5.000000e-01 : f32
    %180 = vector.broadcast %cst_68 : f32 to vector<8x128xf32>
    %181 = arith.mulf %180, %179 : vector<8x128xf32>
    %cst_69 = arith.constant 5.000000e-01 : f32
    %182 = vector.broadcast %cst_69 : f32 to vector<8x128xf32>
    %183 = arith.addf %181, %182 : vector<8x128xf32>
    %184 = vector.extract_strided_slice %178 {offsets = [0, 128], sizes = [8, 128], strides = [1, 1]} : vector<8x512xf32> to vector<8x128xf32>
    %cst_70 = arith.constant 5.000000e-01 : f32
    %185 = vector.broadcast %cst_70 : f32 to vector<8x128xf32>
    %186 = arith.mulf %185, %184 : vector<8x128xf32>
    %cst_71 = arith.constant 5.000000e-01 : f32
    %187 = vector.broadcast %cst_71 : f32 to vector<8x128xf32>
    %188 = arith.addf %186, %187 : vector<8x128xf32>
    %189 = vector.extract_strided_slice %178 {offsets = [0, 256], sizes = [8, 128], strides = [1, 1]} : vector<8x512xf32> to vector<8x128xf32>
    %190 = vector.extract_strided_slice %178 {offsets = [0, 384], sizes = [8, 128], strides = [1, 1]} : vector<8x512xf32> to vector<8x128xf32>
    %cst_72 = arith.constant 5.000000e-01 : f32
    %191 = vector.broadcast %cst_72 : f32 to vector<8x128xf32>
    %192 = arith.mulf %191, %190 : vector<8x128xf32>
    %cst_73 = arith.constant 5.000000e-01 : f32
    %193 = vector.broadcast %cst_73 : f32 to vector<8x128xf32>
    %194 = arith.addf %192, %193 : vector<8x128xf32>
    %195 = arith.mulf %188, %171 : vector<8x128xf32>
    %196 = arith.mulf %183, %189 : vector<8x128xf32>
    %197 = arith.addf %195, %196 : vector<8x128xf32>
    %198 = math.tanh %197 : vector<8x128xf32>
    %199 = arith.mulf %194, %198 : vector<8x128xf32>
    %c56 = arith.constant 56 : index
    %c0_74 = arith.constant 0 : index
    %200 = vector.load %arg9[%c56, %c0_74] : memref<64x512xf32, #tpu.memory_space<vmem>>, vector<8x512xf32>
    %201 = arith.truncf %199 : vector<8x128xf32> to vector<8x128xbf16>
    %cst_75 = arith.constant dense<0.000000e+00> : vector<8x512xf32>
    %202 = tpu.matmul %201, %15, %cst_75 {dimension_numbers = #tpu.dot_dimension_numbers<[1], [0], [0], [1], [0, 0, 1, 1], [], []>} : vector<8x128xbf16>, vector<128x512xbf16>, vector<8x512xf32> -> vector<8x512xf32>
    %203 = arith.addf %200, %202 : vector<8x512xf32>
    %204 = math.tanh %203 : vector<8x512xf32>
    %205 = vector.extract_strided_slice %204 {offsets = [0, 0], sizes = [8, 128], strides = [1, 1]} : vector<8x512xf32> to vector<8x128xf32>
    %cst_76 = arith.constant 5.000000e-01 : f32
    %206 = vector.broadcast %cst_76 : f32 to vector<8x128xf32>
    %207 = arith.mulf %206, %205 : vector<8x128xf32>
    %cst_77 = arith.constant 5.000000e-01 : f32
    %208 = vector.broadcast %cst_77 : f32 to vector<8x128xf32>
    %209 = arith.addf %207, %208 : vector<8x128xf32>
    %210 = vector.extract_strided_slice %204 {offsets = [0, 128], sizes = [8, 128], strides = [1, 1]} : vector<8x512xf32> to vector<8x128xf32>
    %cst_78 = arith.constant 5.000000e-01 : f32
    %211 = vector.broadcast %cst_78 : f32 to vector<8x128xf32>
    %212 = arith.mulf %211, %210 : vector<8x128xf32>
    %cst_79 = arith.constant 5.000000e-01 : f32
    %213 = vector.broadcast %cst_79 : f32 to vector<8x128xf32>
    %214 = arith.addf %212, %213 : vector<8x128xf32>
    %215 = vector.extract_strided_slice %204 {offsets = [0, 256], sizes = [8, 128], strides = [1, 1]} : vector<8x512xf32> to vector<8x128xf32>
    %216 = vector.extract_strided_slice %204 {offsets = [0, 384], sizes = [8, 128], strides = [1, 1]} : vector<8x512xf32> to vector<8x128xf32>
    %cst_80 = arith.constant 5.000000e-01 : f32
    %217 = vector.broadcast %cst_80 : f32 to vector<8x128xf32>
    %218 = arith.mulf %217, %216 : vector<8x128xf32>
    %cst_81 = arith.constant 5.000000e-01 : f32
    %219 = vector.broadcast %cst_81 : f32 to vector<8x128xf32>
    %220 = arith.addf %218, %219 : vector<8x128xf32>
    %221 = arith.mulf %214, %197 : vector<8x128xf32>
    %222 = arith.mulf %209, %215 : vector<8x128xf32>
    %223 = arith.addf %221, %222 : vector<8x128xf32>
    %224 = math.tanh %223 : vector<8x128xf32>
    %225 = arith.mulf %220, %224 : vector<8x128xf32>
    %c0_82 = arith.constant 0 : index
    %c0_83 = arith.constant 0 : index
    %226 = vector.load %arg6[%c0_82, %c0_83] : memref<128x128xf32, #tpu.memory_space<vmem>>, vector<128x128xf32>
    %cst_84 = arith.constant dense<0.000000e+00> : vector<8x128xf32>
    %227 = tpu.matmul %225, %226, %cst_84 {dimension_numbers = #tpu.dot_dimension_numbers<[1], [0], [0], [1], [0, 0, 1, 1], [], []>} : vector<8x128xf32>, vector<128x128xf32>, vector<8x128xf32> -> vector<8x128xf32>
    %c0_85 = arith.constant 0 : index
    %c0_86 = arith.constant 0 : index
    %228 = vector.load %arg7[%c0_85, %c0_86] : memref<1x128xf32, #tpu.memory_space<vmem>>, vector<1x128xf32>
    %229 = vector.broadcast %228 : vector<1x128xf32> to vector<8x128xf32>
    %230 = arith.addf %227, %229 : vector<8x128xf32>
    %c0_87 = arith.constant 0 : index
    %c0_88 = arith.constant 0 : index
    %231 = vector.load %arg8[%c0_87, %c0_88] : memref<8x128xf32, #tpu.memory_space<vmem>>, vector<8x128xf32>
    tpu.vector_store %arg8[%c0_87, %c0_88], %230 {strides = array<i32>} : memref<8x128xf32, #tpu.memory_space<vmem>>, vector<8x128xf32>,
    return
  }
}

</mosaic_0001>

<bundles_post_ra>
// kernel: value_net_forward.1
= control target key start
LH: loop header
LB: loop body
LE: loop exit
PB: predicated region body
PF: predicated region fallthrough
CT: control target
= control target key end

     0   :  { %s2947_s0 = inlined_call_operand.vmem [shape: bf16[64,160], index: 0, kind: input, shape index: {}]   ;;  %s2948_s1 = inlined_call_operand.vmem [shape: bf16[160,40], index: 1, kind: input, shape index: {}]   ;;  %s2949_s2 = inlined_call_operand.vmem [shape: f32[1,40], index: 2, kind: input, shape index: {}]   ;;  %s2950_s3 = inlined_call_operand.vmem [shape: bf16[40,512], index: 3, kind: input, shape index: {}]   ;;  %s2951_s4 = inlined_call_operand.vmem [shape: f32[1,512], index: 4, kind: input, shape index: {}]   ;;  %s2952_s5 = inlined_call_operand.vmem [shape: bf16[128,512], index: 5, kind: input, shape index: {}]   ;;  %s2953_s6 = inlined_call_operand.vmem [shape: f32[128,128], index: 6, kind: input, shape index: {}]   ;;  %s2954_s7 = inlined_call_operand.vmem [shape: f32[1,128], index: 7, kind: input, shape index: {}]   ;;  %s2955_s8 = inlined_call_operand.vmem [shape: f32[8,128], index: 8, kind: output, shape index: {}]  }
   0x1   :  { %v45_v0 = vld [vmem:[%s2952_s5] sm:$0xf]  ;;  %v47_v1 = vld [vmem:[%s2952_s5 + $0x10] sm:$0xf]  ;;  %v49_v2 = vld [vmem:[%s2952_s5 + $0x4] sm:$0xf] }
   0x2   :  { %46 = vst [vmem:[#allocation3] sm:$0xf] %v45_v0  ;;  %48 = vst [vmem:[#allocation3 + $0x4] sm:$0xf] %v47_v1  ;;  %v51_v3 = vld [vmem:[%s2952_s5 + $0x14] sm:$0xf] }
   0x3   :  { %50 = vst [vmem:[#allocation3 + $0x8] sm:$0xf] %v49_v2  ;;  %v53_v4 = vld [vmem:[%s2952_s5 + $0x8] sm:$0xf]  ;;  %v55_v5 = vld [vmem:[%s2952_s5 + $0x18] sm:$0xf] }
   0x4   :  { %52 = vst [vmem:[#allocation3 + $0xc] sm:$0xf] %v51_v3  ;;  %54 = vst [vmem:[#allocation3 + $0x10] sm:$0xf] %v53_v4  ;;  %v57_v6 = vld [vmem:[%s2952_s5 + $0xc] sm:$0xf] }
   0x5   :  { %56 = vst [vmem:[#allocation3 + $0x14] sm:$0xf] %v55_v5  ;;  %v59_v7 = vld [vmem:[%s2952_s5 + $0x1c] sm:$0xff]   ;;  %v63_v8 = vld [vmem:[%s2952_s5 + $0x30] sm:$0xf] }
   0x6   :  { %58 = vst [vmem:[#allocation3 + $0x18] sm:$0xf] %v57_v6  ;;  %60 = vst [vmem:[#allocation3 + $0x1c] sm:$0xff] %v59_v7   ;;  %v65_v9 = vld [vmem:[%s2952_s5 + $0x24] sm:$0xf]  ;;  %v75_v14 = vld [vmem:[%s2952_s5 + $0x3c] sm:$0xff]  }
   0x7   :  { %64 = vst [vmem:[#allocation3 + $0x24] sm:$0xf] %v63_v8  ;;  %v67_v10 = vld [vmem:[%s2952_s5 + $0x34] sm:$0xf]  ;;  %v69_v11 = vld [vmem:[%s2952_s5 + $0x28] sm:$0xf] }
   0x8   :  { %66 = vst [vmem:[#allocation3 + $0x28] sm:$0xf] %v65_v9  ;;  %68 = vst [vmem:[#allocation3 + $0x2c] sm:$0xf] %v67_v10  ;;  %v71_v12 = vld [vmem:[%s2952_s5 + $0x38] sm:$0xf] }
   0x9   :  { %70 = vst [vmem:[#allocation3 + $0x30] sm:$0xf] %v69_v11  ;;  %v73_v13 = vld [vmem:[%s2952_s5 + $0x2c] sm:$0xf]  ;;  %72 = vst [vmem:[#allocation3 + $0x34] sm:$0xf] %v71_v12 }
   0xa   :  { %74 = vst [vmem:[#allocation3 + $0x38] sm:$0xf] %v73_v13  ;;  %76 = vst [vmem:[#allocation3 + $0x3c] sm:$0xff] %v75_v14   ;;  %v79_v15 = vld [vmem:[%s2952_s5 + $0x50] sm:$0xf]  ;;  %v91_v21 = vld [vmem:[%s2952_s5 + $0x5c] sm:$0xff]  }
   0xb   :  { %v81_v16 = vld [vmem:[%s2952_s5 + $0x44] sm:$0xf]  ;;  %v83_v17 = vld [vmem:[%s2952_s5 + $0x54] sm:$0xf]  ;;  %80 = vst [vmem:[#allocation3 + $0x44] sm:$0xf] %v79_v15 }
   0xc   :  { %82 = vst [vmem:[#allocation3 + $0x48] sm:$0xf] %v81_v16  ;;  %84 = vst [vmem:[#allocation3 + $0x4c] sm:$0xf] %v83_v17  ;;  %v85_v18 = vld [vmem:[%s2952_s5 + $0x48] sm:$0xf] }
   0xd   :  { %v87_v19 = vld [vmem:[%s2952_s5 + $0x58] sm:$0xf]  ;;  %v89_v20 = vld [vmem:[%s2952_s5 + $0x4c] sm:$0xf]  ;;  %86 = vst [vmem:[#allocation3 + $0x50] sm:$0xf] %v85_v18 }
   0xe   :  { %88 = vst [vmem:[#allocation3 + $0x54] sm:$0xf] %v87_v19  ;;  %90 = vst [vmem:[#allocation3 + $0x58] sm:$0xf] %v89_v20  ;;  %v95_v22 = vld [vmem:[%s2952_s5 + $0x70] sm:$0xf] }
   0xf   :  { %v97_v23 = vld [vmem:[%s2952_s5 + $0x64] sm:$0xf]  ;;  %92 = vst [vmem:[#allocation3 + $0x5c] sm:$0xff] %v91_v21   ;;  %96 = vst [vmem:[#allocation3 + $0x64] sm:$0xf] %v95_v22  ;;  %v107_v28 = vld [vmem:[%s2952_s5 + $0x7c] sm:$0xff]  }
  0x10   :  { %98 = vst [vmem:[#allocation3 + $0x68] sm:$0xf] %v97_v23  ;;  %v99_v24 = vld [vmem:[%s2952_s5 + $0x74] sm:$0xf]  ;;  %v101_v25 = vld [vmem:[%s2952_s5 + $0x68] sm:$0xf] }
  0x11   :  { %v103_v26 = vld [vmem:[%s2952_s5 + $0x78] sm:$0xf]  ;;  %100 = vst [vmem:[#allocation3 + $0x6c] sm:$0xf] %v99_v24  ;;  %102 = vst [vmem:[#allocation3 + $0x70] sm:$0xf] %v101_v25 }
  0x12   :  { %104 = vst [vmem:[#allocation3 + $0x74] sm:$0xf] %v103_v26  ;;  %v105_v27 = vld [vmem:[%s2952_s5 + $0x6c] sm:$0xf]  ;;  %v111_v29 = vld [vmem:[%s2952_s5 + $0x90] sm:$0xf] }
  0x13   :  { %106 = vst [vmem:[#allocation3 + $0x78] sm:$0xf] %v105_v27  ;;  %108 = vst [vmem:[#allocation3 + $0x7c] sm:$0xff] %v107_v28   ;;  %v113_v30 = vld [vmem:[%s2952_s5 + $0x84] sm:$0xf]  ;;  %v123_v35 = vld [vmem:[%s2952_s5 + $0x9c] sm:$0xff]  }
  0x14   :  { %112 = vst [vmem:[#allocation3 + $0x84] sm:$0xf] %v111_v29  ;;  %v115_v31 = vld [vmem:[%s2952_s5 + $0x94] sm:$0xf]  ;;  %v117_v32 = vld [vmem:[%s2952_s5 + $0x88] sm:$0xf] }
  0x15   :  { %114 = vst [vmem:[#allocation3 + $0x88] sm:$0xf] %v113_v30  ;;  %116 = vst [vmem:[#allocation3 + $0x8c] sm:$0xf] %v115_v31  ;;  %v119_v33 = vld [vmem:[%s2952_s5 + $0x98] sm:$0xf] }
  0x16   :  { %118 = vst [vmem:[#allocation3 + $0x90] sm:$0xf] %v117_v32  ;;  %v121_v34 = vld [vmem:[%s2952_s5 + $0x8c] sm:$0xf]  ;;  %120 = vst [vmem:[#allocation3 + $0x94] sm:$0xf] %v119_v33 }
  0x17   :  { %122 = vst [vmem:[#allocation3 + $0x98] sm:$0xf] %v121_v34  ;;  %124 = vst [vmem:[#allocation3 + $0x9c] sm:$0xff] %v123_v35   ;;  %v127_v36 = vld [vmem:[%s2952_s5 + $0xb0] sm:$0xf]  ;;  %v139_v42 = vld [vmem:[%s2952_s5 + $0xbc] sm:$0xff]  }
  0x18   :  { %v129_v37 = vld [vmem:[%s2952_s5 + $0xa4] sm:$0xf]  ;;  %v131_v38 = vld [vmem:[%s2952_s5 + $0xb4] sm:$0xf]  ;;  %128 = vst [vmem:[#allocation3 + $0xa4] sm:$0xf] %v127_v36 }
  0x19   :  { %130 = vst [vmem:[#allocation3 + $0xa8] sm:$0xf] %v129_v37  ;;  %132 = vst [vmem:[#allocation3 + $0xac] sm:$0xf] %v131_v38  ;;  %v133_v39 = vld [vmem:[%s2952_s5 + $0xa8] sm:$0xf] }
  0x1a   :  { %v135_v40 = vld [vmem:[%s2952_s5 + $0xb8] sm:$0xf]  ;;  %v137_v41 = vld [vmem:[%s2952_s5 + $0xac] sm:$0xf]  ;;  %134 = vst [vmem:[#allocation3 + $0xb0] sm:$0xf] %v133_v39 }
  0x1b   :  { %136 = vst [vmem:[#allocation3 + $0xb4] sm:$0xf] %v135_v40  ;;  %138 = vst [vmem:[#allocation3 + $0xb8] sm:$0xf] %v137_v41  ;;  %v143_v43 = vld [vmem:[%s2952_s5 + $0xd0] sm:$0xf] }
  0x1c   :  { %v145_v44 = vld [vmem:[%s2952_s5 + $0xc4] sm:$0xf]  ;;  %140 = vst [vmem:[#allocation3 + $0xbc] sm:$0xff] %v139_v42   ;;  %144 = vst [vmem:[#allocation3 + $0xc4] sm:$0xf] %v143_v43  ;;  %v155_v49 = vld [vmem:[%s2952_s5 + $0xdc] sm:$0xff]  }
  0x1d   :  { %146 = vst [vmem:[#allocation3 + $0xc8] sm:$0xf] %v145_v44  ;;  %v147_v45 = vld [vmem:[%s2952_s5 + $0xd4] sm:$0xf]  ;;  %v149_v46 = vld [vmem:[%s2952_s5 + $0xc8] sm:$0xf] }
  0x1e   :  { %v151_v47 = vld [vmem:[%s2952_s5 + $0xd8] sm:$0xf]  ;;  %148 = vst [vmem:[#allocation3 + $0xcc] sm:$0xf] %v147_v45  ;;  %150 = vst [vmem:[#allocation3 + $0xd0] sm:$0xf] %v149_v46 }
  0x1f   :  { %152 = vst [vmem:[#allocation3 + $0xd4] sm:$0xf] %v151_v47  ;;  %v153_v48 = vld [vmem:[%s2952_s5 + $0xcc] sm:$0xf]  ;;  %v159_v50 = vld [vmem:[%s2952_s5 + $0xf0] sm:$0xf] }
  0x20   :  { %154 = vst [vmem:[#allocation3 + $0xd8] sm:$0xf] %v153_v48  ;;  %156 = vst [vmem:[#allocation3 + $0xdc] sm:$0xff] %v155_v49   ;;  %v161_v51 = vld [vmem:[%s2952_s5 + $0xe4] sm:$0xf] }
  0x21   :  { %160 = vst [vmem:[#allocation3 + $0xe4] sm:$0xf] %v159_v50  ;;  %v163_v52 = vld [vmem:[%s2952_s5 + $0xf4] sm:$0xf]  ;;  %v165_v53 = vld [vmem:[%s2952_s5 + $0xe8] sm:$0xf] }
  0x22   :  { %162 = vst [vmem:[#allocation3 + $0xe8] sm:$0xf] %v161_v51  ;;  %164 = vst [vmem:[#allocation3 + $0xec] sm:$0xf] %v163_v52  ;;  %v167_v54 = vld [vmem:[%s2952_s5 + $0xf8] sm:$0xf] }
  0x23   :  { %166 = vst [vmem:[#allocation3 + $0xf0] sm:$0xf] %v165_v53  ;;  %v169_v55 = vld [vmem:[%s2952_s5 + $0xec] sm:$0xf]  ;;  %v171_v56 = vld [vmem:[%s2952_s5 + $0xfc] sm:$0xf] }
  0x24   :  { %168 = vst [vmem:[#allocation3 + $0xf4] sm:$0xf] %v167_v54  ;;  %170 = vst [vmem:[#allocation3 + $0xf8] sm:$0xf] %v169_v55 }
  0x25   :  { %172 = vst [vmem:[#allocation3 + $0xfc] sm:$0xf] %v171_v56 }
  0x26   :  { %331 = vsyncadd [#allocation4], 4096  ;;  %v1967_v57 = vld [vmem:[%s2948_s1] sm:$0xff]   ;;  %v2956_v58 = vmov 0   ;;  %v1968_v59 = vld [vmem:[%s2948_s1 + $0x8] sm:$0xff]   ;;  %vm463_vm0 = vcmask 261120  }
  0x27   :  { %476 = vmatprep.subr.bf16.mxu0 %v2956_v58  ;;  %693 = vmatprep.mubr.bf16.mxu1 %v2956_v58  ;;  %v1969_v60 = vld [vmem:[%s2948_s1 + $0x10] sm:$0xff]   ;;  %v1970_v61 = vld [vmem:[%s2948_s1 + $0x18] sm:$0xff]   ;;  %v1979_v62 = vld [vmem:[%s2947_s0 + $0x4] ss:$8 sps:$4 sm:$0xff]   ;;  %vm648_vm1 = vcmask 1043456   ;;  %vm635_vm2 = vcmask 326656  }
  0x28   :  { %477 = vmatpush1.bf16.msra.mxu0 %v1967_v57  ;;  %1859 = vmatprep.mubr.msk.bf16.mxu0 %vm463_vm0, %v1979_v62  ;;  %v1971_v63 = vld [vmem:[%s2948_s1 + $0x20] sm:$0xff]   ;;  %v1972_v2 = vld [vmem:[%s2948_s1 + $0x28] sm:$0xff]   ;;  %v1973_v3 = vld [vmem:[%s2948_s1 + $0x30] sm:$0xff]  }
  0x29   :  { %478 = vmatprep.subr.bf16.mxu0 %v2956_v58  ;;  %v1989_v0 = vld [vmem:[%s2950_s3 + $0x4] ss:$16 sps:$4 sm:$0xff]   ;;  %v1991_v1 = vld [vmem:[%s2950_s3] ss:$16 sps:$4 sm:$0xff]   ;;  %v1974_v4 = vld [vmem:[%s2948_s1 + $0x38] sm:$0xff]  }
  0x2a   :  { %661 = vmatprep.subr.bf16.mxu1 %v1989_v0  ;;  %v1975_v5 = vld [vmem:[%s2948_s1 + $0x40] sm:$0xff]   ;;  %v1976_v6 = vld [vmem:[%s2948_s1 + $0x48] sm:$0xff]   ;;  %v1980_v8 = vld [vmem:[%s2947_s0 + $0x14] ss:$8 sps:$4 sm:$0xff]  }
  0x2b   :  { %662 = vmatpush1.bf16.msra.mxu1 %v1991_v1  ;;  %v1977_v7 = vld [vmem:[%s2947_s0] ss:$8 sps:$4 sm:$0xff]   ;;  %v1982_v9 = vld [vmem:[%s2947_s0 + $0x10] ss:$8 sps:$4 sm:$0xff]   ;;  %v1983_v10 = vld [vmem:[%s2947_s0 + $0x24] ss:$8 sps:$4 sm:$0xff]  }
  0x2c   :  { %479 = vmatpush1.bf16.msra.mxu0 %v1968_v59  ;;  %v1985_v11 = vld [vmem:[%s2947_s0 + $0x20] ss:$8 sps:$4 sm:$0xff]   ;;  %v1986_v12 = vld [vmem:[%s2947_s0 + $0x34] ss:$8 sps:$4 sm:$0xff]   ;;  %v1988_v13 = vld [vmem:[%s2947_s0 + $0x30] ss:$8 sps:$4 sm:$0xff]  }
  0x2d   :  { %480 = vmatprep.subr.bf16.mxu0 %v2956_v58  ;;  %v1992_v14 = vld [vmem:[%s2950_s3 + $0x24] ss:$16 sps:$4 sm:$0xff]   ;;  %v1994_v15 = vld [vmem:[%s2950_s3 + $0x20] ss:$16 sps:$4 sm:$0xff]   ;;  %v1999_v20 = vld [vmem:[%s2950_s3 + $0xc] ss:$16 sps:$4 sm:$0xff]  }
  0x2e   :  { %663 = vmatprep.subr.bf16.mxu1 %v1992_v14  ;;  %v561_v16 = vld [vmem:[%s2950_s3 + $0x40] sm:$0xff]  ;;  %v1997_v30 = vld [vmem:[%s2950_s3 + $0x8] ss:$16 sps:$4 sm:$0xff]   ;;  %v2002_v32 = vld [vmem:[%s2950_s3 + $0x2c] ss:$16 sps:$4 sm:$0xff]  }
  0x2f   :  { %664 = vmatpush1.bf16.msra.mxu1 %v1994_v15  ;;  %v1872_v17 = vcombine.high %v561_v16, %v561_v16  ;;  %v1871_v18 = vcombine.low %v561_v16, %v561_v16  ;;  %v1840_v21 = vld [vmem:[%s2949_s2] ss:$0 sm:$0xff]  ;;  %v562_v34 = vld [vmem:[%s2950_s3 + $0x48] sm:$0xff] }
  0x30   :  { %481 = vmatpush1.bf16.msra.mxu0 %v1969_v60  ;;  %v2000_v38 = vld [vmem:[%s2950_s3 + $0x28] ss:$16 sps:$4 sm:$0xff]   ;;  %v1874_v41 = vcombine.high %v562_v34, %v562_v34  ;;  %v1873_v42 = vcombine.low %v562_v34, %v562_v34 }
  0x31   :  { %482 = vmatprep.subr.bf16.mxu0 %v2956_v58  ;;  %1875 = vmatprep.subr.msk.bf16.mxu1 %vm648_vm1, %v1872_v17  ;;  %v650_v19 = vsel %vm648_vm1, %v1871_v18, 0 }
  0x32   :  { %v656_v46 = vsel %vm648_vm1, %v1873_v42, 0 }
  0x33   :  { %666 = vmatpush1.bf16.msra.mxu1 %v650_v19 }
  0x34   :  { %483 = vmatpush1.bf16.msra.mxu0 %v1970_v61  ;;  %734 = vmatprep.subr.bf16.mxu1 %v1999_v20 }
  0x35   :  { %484 = vmatprep.subr.bf16.mxu0 %v2956_v58 }
  0x38   :  { %485 = vmatpush1.bf16.msra.mxu0 %v1971_v63 }
  0x39   :  { %486 = vmatprep.subr.bf16.mxu0 %v2956_v58 }
  0x3c   :  { %487 = vmatpush1.bf16.msra.mxu0 %v1972_v2  ;;  %v565_v2 = vlaneseq }
  0x3d   :  { %488 = vmatprep.subr.bf16.mxu0 %v2956_v58 }
  0x40   :  { %489 = vmatpush1.bf16.msra.mxu0 %v1973_v3  ;;  %v566_v3 = vshrl.u32 %v565_v2, 7 }
  0x41   :  { %490 = vmatprep.subr.bf16.mxu0 %v2956_v58 }
  0x44   :  { %491 = vmatpush1.bf16.msra.mxu0 %v1974_v4  ;;  %v567_v4 = vsub.s32 0, %v566_v3 }
  0x45   :  { %492 = vmatprep.subr.bf16.mxu0 %v2956_v58 }
  0x48   :  { %493 = vmatpush1.bf16.msra.mxu0 %v1975_v5  ;;  %v563_v5 = vld [vmem:[%s2951_s4] sm:$0xf] }
  0x49   :  { %494 = vmatprep.subr.bf16.mxu0 %v2956_v58 }
  0x4c   :  { %495 = vmatpush1.bf16.msra.mxu0 %v1976_v6  ;;  %v571_v6 = vsub.s32 1, %v566_v3 }
  0x4f   :  { %509 = vmatmul.mubr.bf16.vlgmr.msra.gmra.mrb[0].mxu0 %v1977_v7  ;;  %v568_v7 = vrot.slane %v563_v5, %v567_v4 }
  0x50   :  { %1860 = vmatprep.mubr.msk.bf16.mxu0 %vm463_vm0, %v1980_v8  ;;  %v572_v8 = vrot.slane %v563_v5, %v571_v6 }
  0x57   :  { %517 = vmatmul.mubr.bf16.gmra.mrb[4].mxu0 %v1982_v9 }
  0x58   :  { %1861 = vmatprep.mubr.msk.bf16.mxu0 %vm463_vm0, %v1983_v10 }
  0x5f   :  { %525 = vmatmul.mubr.bf16.gmra.mrb[8].mxu0 %v1985_v11 }
  0x60   :  { %1862 = vmatprep.mubr.msk.bf16.mxu0 %vm463_vm0, %v1986_v12 }
  0x67   :  { %533 = vmatmul.mubr.bf16.gmra.mrb[12].mxu0 %v1988_v13 }
 0x122   :  { %v510_v22 = vpop.f32.mrb[0].mxu0 }
 0x123   :  { %v511_v23 = vadd.f32 %v1840_v21, %v510_v22  ;;  %v512_v24 = vpop.f32.mrb[1].mxu0 }
 0x124   :  { %v513_v25 = vpop.f32.mrb[2].mxu0 }
 0x125   :  { %v514_v26 = vadd.f32 %v1840_v21, %v513_v25  ;;  %v515_v27 = vpop.f32.mrb[3].mxu0  ;;  %v541_v28 = vmax.f32 %v511_v23, 0.0 }
 0x127   :  { %v542_v29 = vmax.f32 %v514_v26, 0.0 }
 0x129   :  { %v549_v31 = vpack.c.bf16 %v542_v29, %v541_v28 }
 0x12a   :  { %v518_v33 = vpop.f32.mrb[4].mxu0 }
 0x12b   :  { %v519_v35 = vadd.f32 %v1840_v21, %v518_v33  ;;  %v520_v36 = vpop.f32.mrb[5].mxu0  ;;  %1876 = vmatmul.mubr.msk.bf16.vlgmr.msra.gmra.mrb[0].mxu1 %vm635_vm2, %v549_v31 }
 0x12c   :  { %735 = vmatpush1.bf16.msra.mxu1 %v1997_v30  ;;  %v521_v37 = vpop.f32.mrb[6].mxu0  ;;  %703 = vmatprep.mubr.bf16.mxu1 %v2956_v58  ;;  %v575_v36 = vsub.s32 2, %v566_v3 }
 0x12d   :  { %v522_v39 = vadd.f32 %v1840_v21, %v521_v37  ;;  %v523_v40 = vpop.f32.mrb[7].mxu0  ;;  %736 = vmatprep.subr.bf16.mxu1 %v2002_v32  ;;  %v543_v43 = vmax.f32 %v519_v35, 0.0 }
 0x12f   :  { %v544_v44 = vmax.f32 %v522_v39, 0.0  ;;  %v579_v39 = vsub.s32 3, %v566_v3 }
 0x130   :  { %737 = vmatpush1.bf16.msra.mxu1 %v2000_v38 }
 0x131   :  { %v550_v45 = vpack.c.bf16 %v544_v44, %v543_v43  ;;  %1880 = vmatprep.subr.msk.bf16.mxu1 %vm648_vm1, %v1874_v41  ;;  %v576_v43 = vrot.slane %v563_v5, %v575_v36  ;;  %v580_v44 = vrot.slane %v563_v5, %v579_v39 }
 0x132   :  { %v526_v47 = vpop.f32.mrb[8].mxu0 }
 0x133   :  { %v527_v48 = vadd.f32 %v1840_v21, %v526_v47  ;;  %v528_v49 = vpop.f32.mrb[9].mxu0  ;;  %1877 = vmatmul.mubr.msk.bf16.gmra.mrb[4].mxu1 %vm635_vm2, %v550_v45 }
 0x134   :  { %v529_v50 = vpop.f32.mrb[10].mxu0  ;;  %713 = vmatprep.mubr.bf16.mxu1 %v2956_v58  ;;  %739 = vmatpush1.bf16.msra.mxu1 %v656_v46 }
 0x135   :  { %v530_v51 = vadd.f32 %v1840_v21, %v529_v50  ;;  %v531_v52 = vpop.f32.mrb[11].mxu0  ;;  %v545_v53 = vmax.f32 %v527_v48, 0.0 }
 0x137   :  { %v546_v54 = vmax.f32 %v530_v51, 0.0 }
 0x139   :  { %v551_v55 = vpack.c.bf16 %v546_v54, %v545_v53 }
 0x13a   :  { %v534_v56 = vpop.f32.mrb[12].mxu0 }
 0x13b   :  { %v535_v57 = vadd.f32 %v1840_v21, %v534_v56  ;;  %v536_v59 = vpop.f32.mrb[13].mxu0  ;;  %1878 = vmatmul.mubr.msk.bf16.gmra.mrb[8].mxu1 %vm635_vm2, %v551_v55 }
 0x13c   :  { %v537_v60 = vpop.f32.mrb[14].mxu0  ;;  %723 = vmatprep.mubr.bf16.mxu1 %v2956_v58 }
 0x13d   :  { %v538_v61 = vadd.f32 %v1840_v21, %v537_v60  ;;  %v539_v62 = vpop.f32.mrb[15].mxu0  ;;  %v547_v63 = vmax.f32 %v535_v57, 0.0 }
 0x13f   :  { %v548_v0 = vmax.f32 %v538_v61, 0.0 }
 0x141   :  { %v552_v1 = vpack.c.bf16 %v548_v0, %v547_v63 }
 0x143   :  { %1879 = vmatmul.mubr.msk.bf16.gmra.mrb[12].mxu1 %vm635_vm2, %v552_v1 }
 0x144   :  { %766 = vmatprep.mubr.bf16.mxu1 %v2956_v58 }
 0x14b   :  { %1881 = vmatmul.mubr.msk.bf16.vlgmr.msra.gmra.mrb[16].mxu1 %vm635_vm2, %v549_v31 }
 0x14c   :  { %776 = vmatprep.mubr.bf16.mxu1 %v2956_v58 }
 0x153   :  { %1882 = vmatmul.mubr.msk.bf16.gmra.mrb[20].mxu1 %vm635_vm2, %v550_v45 }
 0x154   :  { %786 = vmatprep.mubr.bf16.mxu1 %v2956_v58 }
 0x15b   :  { %1883 = vmatmul.mubr.msk.bf16.gmra.mrb[24].mxu1 %vm635_vm2, %v551_v55 }
 0x15c   :  { %796 = vmatprep.mubr.bf16.mxu1 %v2956_v58 }
 0x163   :  { %1884 = vmatmul.mubr.msk.bf16.gmra.mrb[28].mxu1 %vm635_vm2, %v552_v1 }
 0x1fe   :  { %v695_v9 = vpop.f32.mrb[0].mxu1 }
 0x1ff   :  { %v2431_v10 = vadd.f32 %v695_v9, %v568_v7  ;;  %v697_v11 = vpop.f32.mrb[1].mxu1 }
 0x200   :  { %v2433_v12 = vadd.f32 %v697_v11, %v572_v8  ;;  %v699_v13 = vpop.f32.mrb[2].mxu1 }
 0x201   :  { %v2435_v14 = vadd.f32 %v699_v13, %v568_v7  ;;  %v701_v15 = vpop.f32.mrb[3].mxu1 }
 0x202   :  { %v2437_v16 = vadd.f32 %v701_v15, %v572_v8 }
 0x206   :  { %v705_v17 = vpop.f32.mrb[4].mxu1 }
 0x207   :  { %v2439_v18 = vadd.f32 %v705_v17, %v568_v7  ;;  %v707_v19 = vpop.f32.mrb[5].mxu1 }
 0x208   :  { %v2441_v20 = vadd.f32 %v707_v19, %v572_v8  ;;  %v709_v21 = vpop.f32.mrb[6].mxu1 }
 0x209   :  { %v2443_v22 = vadd.f32 %v709_v21, %v568_v7  ;;  %v711_v23 = vpop.f32.mrb[7].mxu1 }
 0x20a   :  { %v2445_v24 = vadd.f32 %v711_v23, %v572_v8 }
 0x20e   :  { %v715_v25 = vpop.f32.mrb[8].mxu1 }
 0x20f   :  { %v2447_v26 = vadd.f32 %v715_v25, %v568_v7  ;;  %v717_v27 = vpop.f32.mrb[9].mxu1 }
 0x210   :  { %v2449_v28 = vadd.f32 %v717_v27, %v572_v8  ;;  %v719_v29 = vpop.f32.mrb[10].mxu1 }
 0x211   :  { %2958 = vst [vmem:[#allocation7_spill] sm:$0xff] %v2447_v26  ;;  %v2451_v30 = vadd.f32 %v719_v29, %v568_v7  ;;  %v721_v31 = vpop.f32.mrb[11].mxu1 }
 0x212   :  { %2959 = vst [vmem:[#allocation8_spill] sm:$0xff] %v2449_v28  ;;  %v2453_v32 = vadd.f32 %v721_v31, %v572_v8 }
 0x213   :  { %2960 = vst [vmem:[#allocation9_spill] sm:$0xff] %v2451_v30 }
 0x214   :  { %2961 = vst [vmem:[#allocation10_spill] sm:$0xff] %v2453_v32 }
 0x216   :  { %v725_v33 = vpop.f32.mrb[12].mxu1 }
 0x217   :  { %v2455_v34 = vadd.f32 %v725_v33, %v568_v7  ;;  %v727_v35 = vpop.f32.mrb[13].mxu1 }
 0x218   :  { %v2457_v37 = vadd.f32 %v727_v35, %v572_v8  ;;  %v729_v38 = vpop.f32.mrb[14].mxu1 }
 0x219   :  { %2962 = vst [vmem:[#allocation11_spill] sm:$0xff] %v2455_v34  ;;  %v2459_v40 = vadd.f32 %v729_v38, %v568_v7  ;;  %v731_v41 = vpop.f32.mrb[15].mxu1 }
 0x21a   :  { %2963 = vst [vmem:[#allocation12_spill] sm:$0xff] %v2457_v37  ;;  %v2461_v42 = vadd.f32 %v731_v41, %v572_v8 }
 0x21b   :  { %2964 = vst [vmem:[#allocation13_spill] sm:$0xff] %v2459_v40 }
 0x21c   :  { %2965 = vst [vmem:[#allocation14_spill] sm:$0xff] %v2461_v42 }
 0x21e   :  { %v768_v45 = vpop.f32.mrb[16].mxu1 }
 0x21f   :  { %v2463_v46 = vadd.f32 %v768_v45, %v576_v43  ;;  %v770_v47 = vpop.f32.mrb[17].mxu1 }
 0x220   :  { %v2465_v48 = vadd.f32 %v770_v47, %v580_v44  ;;  %v772_v49 = vpop.f32.mrb[18].mxu1 }
 0x221   :  { %v2467_v50 = vadd.f32 %v772_v49, %v576_v43  ;;  %v774_v51 = vpop.f32.mrb[19].mxu1 }
 0x222   :  { %v2469_v52 = vadd.f32 %v774_v51, %v580_v44 }
 0x226   :  { %v778_v53 = vpop.f32.mrb[20].mxu1 }
 0x227   :  { %v2471_v54 = vadd.f32 %v778_v53, %v576_v43  ;;  %v780_v55 = vpop.f32.mrb[21].mxu1 }
 0x228   :  { %v2473_v56 = vadd.f32 %v780_v55, %v580_v44  ;;  %v782_v57 = vpop.f32.mrb[22].mxu1 }
 0x229   :  { %v2475_v59 = vadd.f32 %v782_v57, %v576_v43  ;;  %v784_v60 = vpop.f32.mrb[23].mxu1 }
 0x22a   :  { %v2477_v61 = vadd.f32 %v784_v60, %v580_v44 }
 0x22b   :  { %2966 = vst [vmem:[#allocation15_spill] sm:$0xff] %v2475_v59 }
 0x22c   :  { %2967 = vst [vmem:[#allocation16_spill] sm:$0xff] %v2477_v61 }
 0x22e   :  { %v788_v62 = vpop.f32.mrb[24].mxu1 }
 0x22f   :  { %v2479_v63 = vadd.f32 %v788_v62, %v576_v43  ;;  %v790_v0 = vpop.f32.mrb[25].mxu1 }
 0x230   :  { %v2481_v1 = vadd.f32 %v790_v0, %v580_v44  ;;  %v792_v2 = vpop.f32.mrb[26].mxu1 }
 0x231   :  { %2968 = vst [vmem:[#allocation17_spill] sm:$0xff] %v2479_v63  ;;  %v2483_v3 = vadd.f32 %v792_v2, %v576_v43  ;;  %v794_v4 = vpop.f32.mrb[27].mxu1 }
 0x232   :  { %2969 = vst [vmem:[#allocation18_spill] sm:$0xff] %v2481_v1  ;;  %v2485_v5 = vadd.f32 %v794_v4, %v580_v44 }
 0x233   :  { %2970 = vst [vmem:[#allocation19_spill] sm:$0xff] %v2483_v3 }
 0x234   :  { %2971 = vst [vmem:[#allocation20_spill] sm:$0xff] %v2485_v5 }
 0x236   :  { %v798_v6 = vpop.f32.mrb[28].mxu1 }
 0x237   :  { %v2487_v7 = vadd.f32 %v798_v6, %v576_v43  ;;  %v800_v8 = vpop.f32.mrb[29].mxu1 }
 0x238   :  { %v2489_v9 = vadd.f32 %v800_v8, %v580_v44  ;;  %v802_v11 = vpop.f32.mrb[30].mxu1 }
 0x239   :  { %2972 = vst [vmem:[#allocation21_spill] sm:$0xff] %v2487_v7  ;;  %v2491_v13 = vadd.f32 %v802_v11, %v576_v43  ;;  %v804_v15 = vpop.f32.mrb[31].mxu1 }
 0x23a   :  { %2973 = vst [vmem:[#allocation22_spill] sm:$0xff] %v2489_v9  ;;  %v2493_v17 = vadd.f32 %v804_v15, %v580_v44 }
 0x23b   :  { %2974 = vst [vmem:[#allocation23_spill] sm:$0xff] %v2491_v13 }
 0x23c   :  { %2975 = vst [vmem:[#allocation24_spill] sm:$0xff] %v2493_v17 }
 0x23d   :  { %2085 = dma.done.wait [#allocation4], 4096 }
 0x23e   :  { %2086 = vsyncadd [#allocation4], 4294963200  ;;  %911 = vmatprep.mubr.bf16.mxu0 %v2956_v58  ;;  %952 = vmatprep.mubr.bf16.mxu1 %v2956_v58  ;;  %v2497_v19 = vld [vmem:[#allocation3 + $0x8] sm:$0xff]  ;;  %v2499_v21 = vld [vmem:[#allocation3] sm:$0xff]  ;;  %v2976_v17 = vmov 0   ;;  %vm2089_vm3 = vmmov 0  }
 0x23f   :  { %v2501_v23 = vld [vmem:[#allocation3 + $0x18] sm:$0xff]  ;;  %879 = vmatprep.subr.bf16.mxu0 %v2497_v19  ;;  %v2505_v25 = vld [vmem:[#allocation3 + $0x10] sm:$0xff]  ;;  %v2507_v27 = vld [vmem:[#allocation3 + $0x28] sm:$0xff] }
 0x240   :  { %920 = vmatprep.subr.bf16.mxu1 %v2501_v23  ;;  %880 = vmatpush1.bf16.msra.mxu0 %v2499_v21  ;;  %v2511_v29 = vld [vmem:[#allocation3 + $0x38] sm:$0xff]  ;;  %v2514_v31 = vld [vmem:[#allocation3 + $0x20] sm:$0xff]  ;;  %v2517_v33 = vld [vmem:[#allocation3 + $0x30] sm:$0xff] }
 0x241   :  { %921 = vmatpush1.bf16.msra.mxu1 %v2505_v25  ;;  %881 = vmatprep.subr.bf16.mxu0 %v2507_v27  ;;  %v2519_v35 = vld [vmem:[#allocation3 + $0x48] sm:$0xff]  ;;  %v2521_v36 = vld [vmem:[#allocation3 + $0x58] sm:$0xff]  ;;  %v2526_v38 = vld [vmem:[#allocation3 + $0x40] sm:$0xff] }
 0x242   :  { %922 = vmatprep.subr.bf16.mxu1 %v2511_v29  ;;  %v2529_v39 = vld [vmem:[#allocation3 + $0x50] sm:$0xff]  ;;  %v2531_v41 = vld [vmem:[#allocation3 + $0x68] sm:$0xff]  ;;  %v2533_v43 = vld [vmem:[#allocation3 + $0x78] sm:$0xff] }
 0x243   :  { %v2538_v44 = vld [vmem:[#allocation3 + $0x60] sm:$0xff]  ;;  %v2541_v45 = vld [vmem:[#allocation3 + $0x70] sm:$0xff]  ;;  %v2543_v47 = vld [vmem:[#allocation3 + $0x88] sm:$0xff] }
 0x244   :  { %882 = vmatpush1.bf16.msra.mxu0 %v2514_v31  ;;  %v2545_v49 = vld [vmem:[#allocation3 + $0x98] sm:$0xff]  ;;  %v2550_v51 = vld [vmem:[#allocation3 + $0x80] sm:$0xff]  ;;  %v2553_v53 = vld [vmem:[#allocation3 + $0x90] sm:$0xff] }
 0x245   :  { %923 = vmatpush1.bf16.msra.mxu1 %v2517_v33  ;;  %883 = vmatprep.subr.bf16.mxu0 %v2519_v35  ;;  %v2555_v55 = vld [vmem:[#allocation3 + $0xa8] sm:$0xff]  ;;  %v2557_v57 = vld [vmem:[#allocation3 + $0xb8] sm:$0xff]  ;;  %v2562_v60 = vld [vmem:[#allocation3 + $0xa0] sm:$0xff] }
 0x246   :  { %924 = vmatprep.subr.bf16.mxu1 %v2521_v36  ;;  %v2565_v62 = vld [vmem:[#allocation3 + $0xb0] sm:$0xff]  ;;  %v2567_v0 = vld [vmem:[#allocation3 + $0xc8] sm:$0xff]  ;;  %v2569_v2 = vld [vmem:[#allocation3 + $0xd8] sm:$0xff] }
 0x247   :  { %v2574_v4 = vld [vmem:[#allocation3 + $0xc0] sm:$0xff]  ;;  %v2577_v6 = vld [vmem:[#allocation3 + $0xd0] sm:$0xff]  ;;  %v2579_v8 = vld [vmem:[#allocation3 + $0xe8] sm:$0xff] }
 0x248   :  { %884 = vmatpush1.bf16.msra.mxu0 %v2526_v38  ;;  %v2581_v11 = vld [vmem:[#allocation3 + $0xf8] sm:$0xff]  ;;  %v2586_v15 = vld [vmem:[#allocation3 + $0xe0] sm:$0xff]  ;;  %v2589_v58 = vld [vmem:[#allocation3 + $0xf0] sm:$0xff] }
 0x249   :  { %925 = vmatpush1.bf16.msra.mxu1 %v2529_v39  ;;  %885 = vmatprep.subr.bf16.mxu0 %v2531_v41 }
 0x24a   :  { %926 = vmatprep.subr.bf16.mxu1 %v2533_v43 }
 0x24c   :  { %886 = vmatpush1.bf16.msra.mxu0 %v2538_v44 }
 0x24d   :  { %927 = vmatpush1.bf16.msra.mxu1 %v2541_v45  ;;  %887 = vmatprep.subr.bf16.mxu0 %v2543_v47 }
 0x24e   :  { %928 = vmatprep.subr.bf16.mxu1 %v2545_v49 }
 0x250   :  { %888 = vmatpush1.bf16.msra.mxu0 %v2550_v51 }
 0x251   :  { %929 = vmatpush1.bf16.msra.mxu1 %v2553_v53  ;;  %889 = vmatprep.subr.bf16.mxu0 %v2555_v55 }
 0x252   :  { %930 = vmatprep.subr.bf16.mxu1 %v2557_v57 }
 0x254   :  { %890 = vmatpush1.bf16.msra.mxu0 %v2562_v60 }
 0x255   :  { %931 = vmatpush1.bf16.msra.mxu1 %v2565_v62  ;;  %891 = vmatprep.subr.bf16.mxu0 %v2567_v0 }
 0x256   :  { %932 = vmatprep.subr.bf16.mxu1 %v2569_v2 }
 0x258   :  { %892 = vmatpush1.bf16.msra.mxu0 %v2574_v4 }
 0x259   :  { %933 = vmatpush1.bf16.msra.mxu1 %v2577_v6  ;;  %893 = vmatprep.subr.bf16.mxu0 %v2579_v8 }
 0x25a   :  { %934 = vmatprep.subr.bf16.mxu1 %v2581_v11 }
 0x25c   :  { %894 = vmatpush1.bf16.msra.mxu0 %v2586_v15 }
 0x25d   :  { %935 = vmatpush1.bf16.msra.mxu1 %v2589_v58  ;;  %985 = vmatprep.subr.bf16.mxu0 %v2497_v19 }
 0x25e   :  { %1026 = vmatprep.subr.bf16.mxu1 %v2501_v23 }
 0x25f   :  { %912 = vmatmul.mubr.bf16.vlgmr.msra.gmra.mrb[16].mxu0 %v2976_v17 }
 0x260   :  { %953 = vmatmul.mubr.bf16.vlgmr.msra.gmra.mrb[32].mxu1 %v2976_v17  ;;  %986 = vmatpush1.bf16.msra.mxu0 %v2499_v21 }
 0x261   :  { %1027 = vmatpush1.bf16.msra.mxu1 %v2505_v25  ;;  %987 = vmatprep.subr.bf16.mxu0 %v2507_v27 }
 0x262   :  { %1028 = vmatprep.subr.bf16.mxu1 %v2511_v29  ;;  %1017 = vmatprep.mubr.bf16.mxu0 %v2976_v17 }
 0x263   :  { %1058 = vmatprep.mubr.bf16.mxu1 %v2976_v17 }
 0x264   :  { %988 = vmatpush1.bf16.msra.mxu0 %v2514_v31 }
 0x265   :  { %1029 = vmatpush1.bf16.msra.mxu1 %v2517_v33  ;;  %989 = vmatprep.subr.bf16.mxu0 %v2519_v35 }
 0x266   :  { %1030 = vmatprep.subr.bf16.mxu1 %v2521_v36 }
 0x268   :  { %990 = vmatpush1.bf16.msra.mxu0 %v2526_v38 }
 0x269   :  { %1031 = vmatpush1.bf16.msra.mxu1 %v2529_v39  ;;  %991 = vmatprep.subr.bf16.mxu0 %v2531_v41 }
 0x26a   :  { %1032 = vmatprep.subr.bf16.mxu1 %v2533_v43 }
 0x26c   :  { %992 = vmatpush1.bf16.msra.mxu0 %v2538_v44 }
 0x26d   :  { %1033 = vmatpush1.bf16.msra.mxu1 %v2541_v45  ;;  %993 = vmatprep.subr.bf16.mxu0 %v2543_v47 }
 0x26e   :  { %1034 = vmatprep.subr.bf16.mxu1 %v2545_v49 }
 0x270   :  { %994 = vmatpush1.bf16.msra.mxu0 %v2550_v51 }
 0x271   :  { %1035 = vmatpush1.bf16.msra.mxu1 %v2553_v53  ;;  %995 = vmatprep.subr.bf16.mxu0 %v2555_v55 }
 0x272   :  { %1036 = vmatprep.subr.bf16.mxu1 %v2557_v57 }
 0x274   :  { %996 = vmatpush1.bf16.msra.mxu0 %v2562_v60 }
 0x275   :  { %1037 = vmatpush1.bf16.msra.mxu1 %v2565_v62  ;;  %997 = vmatprep.subr.bf16.mxu0 %v2567_v0 }
 0x276   :  { %1038 = vmatprep.subr.bf16.mxu1 %v2569_v2 }
 0x278   :  { %998 = vmatpush1.bf16.msra.mxu0 %v2574_v4 }
 0x279   :  { %1039 = vmatpush1.bf16.msra.mxu1 %v2577_v6  ;;  %999 = vmatprep.subr.bf16.mxu0 %v2579_v8 }
 0x27a   :  { %1040 = vmatprep.subr.bf16.mxu1 %v2581_v11 }
 0x27c   :  { %1000 = vmatpush1.bf16.msra.mxu0 %v2586_v15 }
 0x27d   :  { %1041 = vmatpush1.bf16.msra.mxu1 %v2589_v58  ;;  %1091 = vmatprep.subr.bf16.mxu0 %v2497_v19 }
 0x27e   :  { %1132 = vmatprep.subr.bf16.mxu1 %v2501_v23 }
 0x332   :  { %v913_v13 = vpop.f32.mrb[16].mxu0 }
 0x333   :  { %v954_v42 = vpop.f32.mrb[32].mxu1  ;;  %v961_v40 = vadd.f32 %v913_v13, %v2431_v10  ;;  %v915_v9 = vpop.f32.mrb[17].mxu0 }
 0x334   :  { %v963_v7 = vadd.f32 %v954_v42, %v2463_v46  ;;  %v956_v37 = vpop.f32.mrb[33].mxu1  ;;  %v962_v34 = vadd.f32 %v915_v9, %v2433_v12  ;;  %v917_v5 = vpop.f32.mrb[18].mxu0 }
 0x335   :  { %v958_v3 = vpop.f32.mrb[34].mxu1  ;;  %2005 = vtanh.f32 %v961_v40  ;;  %v918_v32 = vpop.f32.mrb[19].mxu0  ;;  %v964_v1 = vadd.f32 %v956_v37, %v2465_v48 }
 0x336   :  { %v959_v30 = vpop.f32.mrb[35].mxu1  ;;  %2007 = vtanh.f32 %v962_v34 }
 0x337   :  { %2009 = vtanh.f32 %v963_v7 }
 0x338   :  { %2011 = vtanh.f32 %v964_v1 }
 0x33f   :  { %v2006_v63 = vpop.eup %2005 }
 0x340   :  { %v2008_v28 = vpop.eup %2007  ;;  %v969_v26 = vmul.f32 0.5, %v2006_v63 }
 0x341   :  { %v2010_v61 = vpop.eup %2009  ;;  %v971_v10 = vmul.f32 0.5, %v2008_v28 }
 0x342   :  { %v970_v13 = vadd.f32 0.5, %v969_v26  ;;  %v2012_v32 = vpop.eup %2011 }
 0x343   :  { %v972_v42 = vadd.f32 0.5, %v971_v10  ;;  %v973_v30 = vmul.f32 0.5, %v2012_v32 }
 0x344   :  { %v976_v46 = vmul.f32 %v2010_v61, %v970_v13 }
 0x345   :  { %v975_v59 = vmul.f32 0.0, %v972_v42  ;;  %v974_v34 = vadd.f32 0.5, %v973_v30 }
 0x347   :  { %v2635_v12 = vadd.f32 %v976_v46, %v975_v59 }
 0x349   :  { %2013 = vtanh.f32 %v2635_v12 }
 0x353   :  { %v2014_v40 = vpop.eup %2013 }
 0x354   :  { %v979_v3 = vmul.f32 %v2014_v40, %v974_v34 }
 0x356   :  { %v984_v37 = vpack.c.bf16 %v979_v3, %v979_v3 }
 0x358   :  { %1018 = vmatmul.mubr.bf16.vlgmr.msra.gmra.mrb[20].mxu0 %v984_v37  ;;  %1059 = vmatmul.mubr.bf16.vlgmr.msra.gmra.mrb[36].mxu1 %v984_v37 }
 0x359   :  { %1092 = vmatpush1.bf16.msra.mxu0 %v2499_v21  ;;  %1133 = vmatpush1.bf16.msra.mxu1 %v2505_v25 }
 0x35a   :  { %1093 = vmatprep.subr.bf16.mxu0 %v2507_v27  ;;  %1134 = vmatprep.subr.bf16.mxu1 %v2511_v29 }
 0x35b   :  { %1123 = vmatprep.mubr.bf16.mxu0 %v2976_v17  ;;  %1164 = vmatprep.mubr.bf16.mxu1 %v2976_v17 }
 0x35d   :  { %1094 = vmatpush1.bf16.msra.mxu0 %v2514_v31  ;;  %1135 = vmatpush1.bf16.msra.mxu1 %v2517_v33 }
 0x35e   :  { %1095 = vmatprep.subr.bf16.mxu0 %v2519_v35  ;;  %1136 = vmatprep.subr.bf16.mxu1 %v2521_v36 }
 0x361   :  { %1096 = vmatpush1.bf16.msra.mxu0 %v2526_v38  ;;  %1137 = vmatpush1.bf16.msra.mxu1 %v2529_v39 }
 0x362   :  { %1097 = vmatprep.subr.bf16.mxu0 %v2531_v41  ;;  %1138 = vmatprep.subr.bf16.mxu1 %v2533_v43 }
 0x365   :  { %1098 = vmatpush1.bf16.msra.mxu0 %v2538_v44  ;;  %1139 = vmatpush1.bf16.msra.mxu1 %v2541_v45 }
 0x366   :  { %1099 = vmatprep.subr.bf16.mxu0 %v2543_v47  ;;  %1140 = vmatprep.subr.bf16.mxu1 %v2545_v49 }
 0x369   :  { %1100 = vmatpush1.bf16.msra.mxu0 %v2550_v51  ;;  %1141 = vmatpush1.bf16.msra.mxu1 %v2553_v53 }
 0x36a   :  { %1101 = vmatprep.subr.bf16.mxu0 %v2555_v55  ;;  %1142 = vmatprep.subr.bf16.mxu1 %v2557_v57 }
 0x36d   :  { %1102 = vmatpush1.bf16.msra.mxu0 %v2562_v60  ;;  %1143 = vmatpush1.bf16.msra.mxu1 %v2565_v62 }
 0x36e   :  { %1103 = vmatprep.subr.bf16.mxu0 %v2567_v0  ;;  %1144 = vmatprep.subr.bf16.mxu1 %v2569_v2 }
 0x371   :  { %1104 = vmatpush1.bf16.msra.mxu0 %v2574_v4  ;;  %1145 = vmatpush1.bf16.msra.mxu1 %v2577_v6 }
 0x372   :  { %1105 = vmatprep.subr.bf16.mxu0 %v2579_v8  ;;  %1146 = vmatprep.subr.bf16.mxu1 %v2581_v11 }
 0x375   :  { %1106 = vmatpush1.bf16.msra.mxu0 %v2586_v15  ;;  %1147 = vmatpush1.bf16.msra.mxu1 %v2589_v58 }
 0x376   :  { %1197 = vmatprep.subr.bf16.mxu0 %v2497_v19  ;;  %1238 = vmatprep.subr.bf16.mxu1 %v2501_v23 }
 0x42b   :  { %v1019_v26 = vpop.f32.mrb[20].mxu0  ;;  %v1060_v28 = vpop.f32.mrb[36].mxu1 }
 0x42c   :  { %v1067_v48 = vadd.f32 %v1019_v26, %v2435_v14  ;;  %v1021_v59 = vpop.f32.mrb[21].mxu0  ;;  %v1062_v61 = vpop.f32.mrb[37].mxu1  ;;  %v1069_v7 = vadd.f32 %v1060_v28, %v2467_v50 }
 0x42d   :  { %v1068_v63 = vadd.f32 %v1021_v59, %v2437_v16  ;;  %v1023_v1 = vpop.f32.mrb[22].mxu0  ;;  %v1064_v5 = vpop.f32.mrb[38].mxu1  ;;  %v1070_v13 = vadd.f32 %v1062_v61, %v2469_v52 }
 0x42e   :  { %2015 = vtanh.f32 %v1067_v48  ;;  %v1024_v9 = vpop.f32.mrb[23].mxu0  ;;  %v1065_v10 = vpop.f32.mrb[39].mxu1 }
 0x42f   :  { %2017 = vtanh.f32 %v1068_v63 }
 0x430   :  { %2019 = vtanh.f32 %v1069_v7 }
 0x431   :  { %2021 = vtanh.f32 %v1070_v13 }
 0x438   :  { %v2016_v42 = vpop.eup %2015 }
 0x439   :  { %v1075_v46 = vmul.f32 0.5, %v2016_v42  ;;  %v2018_v32 = vpop.eup %2017 }
 0x43a   :  { %v1077_v14 = vmul.f32 0.5, %v2018_v32  ;;  %v2020_v34 = vpop.eup %2019 }
 0x43b   :  { %v1076_v30 = vadd.f32 0.5, %v1075_v46  ;;  %v2022_v50 = vpop.eup %2021 }
 0x43c   :  { %v1078_v40 = vadd.f32 0.5, %v1077_v14  ;;  %v1079_v26 = vmul.f32 0.5, %v2022_v50 }
 0x43d   :  { %v1082_v16 = vmul.f32 %v2020_v34, %v1076_v30 }
 0x43e   :  { %v1081_v3 = vmul.f32 %v1078_v40, %v2635_v12  ;;  %v1080_v28 = vadd.f32 0.5, %v1079_v26 }
 0x440   :  { %v2677_v37 = vadd.f32 %v1082_v16, %v1081_v3 }
 0x442   :  { %2023 = vtanh.f32 %v2677_v37 }
 0x44c   :  { %v2024_v48 = vpop.eup %2023 }
 0x44d   :  { %v1085_v52 = vmul.f32 %v2024_v48, %v1080_v28 }
 0x44f   :  { %v1090_v59 = vpack.c.bf16 %v1085_v52, %v1085_v52 }
 0x451   :  { %1124 = vmatmul.mubr.bf16.vlgmr.msra.gmra.mrb[24].mxu0 %v1090_v59  ;;  %1165 = vmatmul.mubr.bf16.vlgmr.msra.gmra.mrb[40].mxu1 %v1090_v59 }
 0x452   :  { %1198 = vmatpush1.bf16.msra.mxu0 %v2499_v21  ;;  %1239 = vmatpush1.bf16.msra.mxu1 %v2505_v25 }
 0x453   :  { %1199 = vmatprep.subr.bf16.mxu0 %v2507_v27  ;;  %1240 = vmatprep.subr.bf16.mxu1 %v2511_v29 }
 0x454   :  { %1229 = vmatprep.mubr.bf16.mxu0 %v2976_v17  ;;  %1270 = vmatprep.mubr.bf16.mxu1 %v2976_v17 }
 0x456   :  { %1200 = vmatpush1.bf16.msra.mxu0 %v2514_v31  ;;  %1241 = vmatpush1.bf16.msra.mxu1 %v2517_v33 }
 0x457   :  { %1201 = vmatprep.subr.bf16.mxu0 %v2519_v35  ;;  %1242 = vmatprep.subr.bf16.mxu1 %v2521_v36 }
 0x45a   :  { %1202 = vmatpush1.bf16.msra.mxu0 %v2526_v38  ;;  %1243 = vmatpush1.bf16.msra.mxu1 %v2529_v39 }
 0x45b   :  { %1203 = vmatprep.subr.bf16.mxu0 %v2531_v41  ;;  %1244 = vmatprep.subr.bf16.mxu1 %v2533_v43 }
 0x45e   :  { %1204 = vmatpush1.bf16.msra.mxu0 %v2538_v44  ;;  %1245 = vmatpush1.bf16.msra.mxu1 %v2541_v45 }
 0x45f   :  { %1205 = vmatprep.subr.bf16.mxu0 %v2543_v47  ;;  %1246 = vmatprep.subr.bf16.mxu1 %v2545_v49 }
 0x462   :  { %1206 = vmatpush1.bf16.msra.mxu0 %v2550_v51  ;;  %1247 = vmatpush1.bf16.msra.mxu1 %v2553_v53 }
 0x463   :  { %1207 = vmatprep.subr.bf16.mxu0 %v2555_v55  ;;  %1248 = vmatprep.subr.bf16.mxu1 %v2557_v57 }
 0x466   :  { %1208 = vmatpush1.bf16.msra.mxu0 %v2562_v60  ;;  %1249 = vmatpush1.bf16.msra.mxu1 %v2565_v62 }
 0x467   :  { %1209 = vmatprep.subr.bf16.mxu0 %v2567_v0  ;;  %1250 = vmatprep.subr.bf16.mxu1 %v2569_v2 }
 0x46a   :  { %1210 = vmatpush1.bf16.msra.mxu0 %v2574_v4  ;;  %1251 = vmatpush1.bf16.msra.mxu1 %v2577_v6 }
 0x46b   :  { %1211 = vmatprep.subr.bf16.mxu0 %v2579_v8  ;;  %1252 = vmatprep.subr.bf16.mxu1 %v2581_v11 }
 0x46e   :  { %1212 = vmatpush1.bf16.msra.mxu0 %v2586_v15  ;;  %1253 = vmatpush1.bf16.msra.mxu1 %v2589_v58 }
 0x46f   :  { %1303 = vmatprep.subr.bf16.mxu0 %v2497_v19  ;;  %1344 = vmatprep.subr.bf16.mxu1 %v2501_v23 }
 0x524   :  { %v1125_v12 = vpop.f32.mrb[24].mxu0  ;;  %v1166_v61 = vpop.f32.mrb[40].mxu1 }
 0x525   :  { %v1173_v63 = vadd.f32 %v1125_v12, %v2439_v18  ;;  %v1127_v1 = vpop.f32.mrb[25].mxu0  ;;  %v1168_v5 = vpop.f32.mrb[41].mxu1  ;;  %v1175_v13 = vadd.f32 %v1166_v61, %v2471_v54 }
 0x526   :  { %v1174_v7 = vadd.f32 %v1127_v1, %v2441_v20  ;;  %v1129_v9 = vpop.f32.mrb[26].mxu0  ;;  %v1170_v10 = vpop.f32.mrb[42].mxu1  ;;  %v1176_v32 = vadd.f32 %v1168_v5, %v2473_v56 }
 0x527   :  { %2025 = vtanh.f32 %v1173_v63  ;;  %v1130_v42 = vpop.f32.mrb[27].mxu0  ;;  %v1171_v46 = vpop.f32.mrb[43].mxu1  ;;  %v2977_v10 = vld [vmem:[#allocation15_spill] sm:$0xff] }
 0x528   :  { %2027 = vtanh.f32 %v1174_v7 }
 0x529   :  { %2029 = vtanh.f32 %v1175_v13 }
 0x52a   :  { %2031 = vtanh.f32 %v1176_v32  ;;  %v2978_v32 = vld [vmem:[#allocation16_spill] sm:$0xff] }
 0x531   :  { %v2026_v30 = vpop.eup %2025 }
 0x532   :  { %v1181_v14 = vmul.f32 0.5, %v2026_v30  ;;  %v2028_v34 = vpop.eup %2027 }
 0x533   :  { %v1183_v18 = vmul.f32 0.5, %v2028_v34  ;;  %v2030_v16 = vpop.eup %2029 }
 0x534   :  { %v1182_v40 = vadd.f32 0.5, %v1181_v14  ;;  %v2032_v54 = vpop.eup %2031 }
 0x535   :  { %v1184_v3 = vadd.f32 0.5, %v1183_v18  ;;  %v1185_v28 = vmul.f32 0.5, %v2032_v54 }
 0x536   :  { %v1188_v20 = vmul.f32 %v2030_v16, %v1182_v40 }
 0x537   :  { %v1187_v50 = vmul.f32 %v1184_v3, %v2677_v37  ;;  %v1186_v48 = vadd.f32 0.5, %v1185_v28 }
 0x539   :  { %v2719_v26 = vadd.f32 %v1188_v20, %v1187_v50 }
 0x53b   :  { %2033 = vtanh.f32 %v2719_v26 }
 0x545   :  { %v2034_v52 = vpop.eup %2033 }
 0x546   :  { %v1191_v56 = vmul.f32 %v2034_v52, %v1186_v48 }
 0x548   :  { %v1196_v59 = vpack.c.bf16 %v1191_v56, %v1191_v56 }
 0x54a   :  { %1230 = vmatmul.mubr.bf16.vlgmr.msra.gmra.mrb[28].mxu0 %v1196_v59  ;;  %1271 = vmatmul.mubr.bf16.vlgmr.msra.gmra.mrb[44].mxu1 %v1196_v59 }
 0x54b   :  { %1304 = vmatpush1.bf16.msra.mxu0 %v2499_v21  ;;  %1345 = vmatpush1.bf16.msra.mxu1 %v2505_v25 }
 0x54c   :  { %1305 = vmatprep.subr.bf16.mxu0 %v2507_v27  ;;  %1346 = vmatprep.subr.bf16.mxu1 %v2511_v29 }
 0x54d   :  { %1335 = vmatprep.mubr.bf16.mxu0 %v2976_v17  ;;  %1376 = vmatprep.mubr.bf16.mxu1 %v2976_v17 }
 0x54f   :  { %1306 = vmatpush1.bf16.msra.mxu0 %v2514_v31  ;;  %1347 = vmatpush1.bf16.msra.mxu1 %v2517_v33 }
 0x550   :  { %1307 = vmatprep.subr.bf16.mxu0 %v2519_v35  ;;  %1348 = vmatprep.subr.bf16.mxu1 %v2521_v36 }
 0x553   :  { %1308 = vmatpush1.bf16.msra.mxu0 %v2526_v38  ;;  %1349 = vmatpush1.bf16.msra.mxu1 %v2529_v39 }
 0x554   :  { %1309 = vmatprep.subr.bf16.mxu0 %v2531_v41  ;;  %1350 = vmatprep.subr.bf16.mxu1 %v2533_v43 }
 0x557   :  { %1310 = vmatpush1.bf16.msra.mxu0 %v2538_v44  ;;  %1351 = vmatpush1.bf16.msra.mxu1 %v2541_v45 }
 0x558   :  { %1311 = vmatprep.subr.bf16.mxu0 %v2543_v47  ;;  %1352 = vmatprep.subr.bf16.mxu1 %v2545_v49 }
 0x55b   :  { %1312 = vmatpush1.bf16.msra.mxu0 %v2550_v51  ;;  %1353 = vmatpush1.bf16.msra.mxu1 %v2553_v53 }
 0x55c   :  { %1313 = vmatprep.subr.bf16.mxu0 %v2555_v55  ;;  %1354 = vmatprep.subr.bf16.mxu1 %v2557_v57 }
 0x55f   :  { %1314 = vmatpush1.bf16.msra.mxu0 %v2562_v60  ;;  %1355 = vmatpush1.bf16.msra.mxu1 %v2565_v62 }
 0x560   :  { %1315 = vmatprep.subr.bf16.mxu0 %v2567_v0  ;;  %1356 = vmatprep.subr.bf16.mxu1 %v2569_v2 }
 0x563   :  { %1316 = vmatpush1.bf16.msra.mxu0 %v2574_v4  ;;  %1357 = vmatpush1.bf16.msra.mxu1 %v2577_v6 }
 0x564   :  { %1317 = vmatprep.subr.bf16.mxu0 %v2579_v8  ;;  %1358 = vmatprep.subr.bf16.mxu1 %v2581_v11 }
 0x567   :  { %1318 = vmatpush1.bf16.msra.mxu0 %v2586_v15  ;;  %1359 = vmatpush1.bf16.msra.mxu1 %v2589_v58 }
 0x568   :  { %1409 = vmatprep.subr.bf16.mxu0 %v2497_v19  ;;  %1450 = vmatprep.subr.bf16.mxu1 %v2501_v23 }
 0x61d   :  { %v1231_v37 = vpop.f32.mrb[28].mxu0  ;;  %v1272_v12 = vpop.f32.mrb[44].mxu1 }
 0x61e   :  { %v1279_v61 = vadd.f32 %v1231_v37, %v2443_v22  ;;  %v1233_v63 = vpop.f32.mrb[29].mxu0  ;;  %v1274_v1 = vpop.f32.mrb[45].mxu1  ;;  %v1281_v13 = vadd.f32 %v1272_v12, %v2977_v10  ;;  %v2979_v12 = vld [vmem:[#allocation7_spill] sm:$0xff] }
 0x61f   :  { %v1280_v5 = vadd.f32 %v1233_v63, %v2445_v24  ;;  %v1235_v7 = vpop.f32.mrb[30].mxu0  ;;  %v1276_v9 = vpop.f32.mrb[46].mxu1  ;;  %v1282_v30 = vadd.f32 %v1274_v1, %v2978_v32 }
 0x620   :  { %2035 = vtanh.f32 %v1279_v61  ;;  %v1236_v42 = vpop.f32.mrb[31].mxu0  ;;  %v1277_v46 = vpop.f32.mrb[47].mxu1 }
 0x621   :  { %2037 = vtanh.f32 %v1280_v5  ;;  %v2980_v5 = vld [vmem:[#allocation8_spill] sm:$0xff] }
 0x622   :  { %2039 = vtanh.f32 %v1281_v13  ;;  %v2981_v13 = vld [vmem:[#allocation17_spill] sm:$0xff] }
 0x623   :  { %2041 = vtanh.f32 %v1282_v30  ;;  %v2982_v30 = vld [vmem:[#allocation18_spill] sm:$0xff] }
 0x62a   :  { %v2036_v14 = vpop.eup %2035 }
 0x62b   :  { %v1287_v34 = vmul.f32 0.5, %v2036_v14  ;;  %v2038_v40 = vpop.eup %2037 }
 0x62c   :  { %v1289_v22 = vmul.f32 0.5, %v2038_v40  ;;  %v2040_v16 = vpop.eup %2039 }
 0x62d   :  { %v1288_v18 = vadd.f32 0.5, %v1287_v34  ;;  %v2042_v54 = vpop.eup %2041 }
 0x62e   :  { %v1290_v3 = vadd.f32 0.5, %v1289_v22  ;;  %v1291_v28 = vmul.f32 0.5, %v2042_v54 }
 0x62f   :  { %v1294_v24 = vmul.f32 %v2040_v16, %v1288_v18 }
 0x630   :  { %v1293_v20 = vmul.f32 %v1290_v3, %v2719_v26  ;;  %v1292_v48 = vadd.f32 0.5, %v1291_v28 }
 0x632   :  { %v2761_v50 = vadd.f32 %v1294_v24, %v1293_v20 }
 0x634   :  { %2043 = vtanh.f32 %v2761_v50 }
 0x63e   :  { %v2044_v52 = vpop.eup %2043 }
 0x63f   :  { %v1297_v56 = vmul.f32 %v2044_v52, %v1292_v48 }
 0x641   :  { %v1302_v59 = vpack.c.bf16 %v1297_v56, %v1297_v56 }
 0x643   :  { %1336 = vmatmul.mubr.bf16.vlgmr.msra.gmra.mrb[32].mxu0 %v1302_v59  ;;  %1377 = vmatmul.mubr.bf16.vlgmr.msra.gmra.mrb[48].mxu1 %v1302_v59 }
 0x644   :  { %1410 = vmatpush1.bf16.msra.mxu0 %v2499_v21  ;;  %1451 = vmatpush1.bf16.msra.mxu1 %v2505_v25 }
 0x645   :  { %1411 = vmatprep.subr.bf16.mxu0 %v2507_v27  ;;  %1452 = vmatprep.subr.bf16.mxu1 %v2511_v29 }
 0x646   :  { %1441 = vmatprep.mubr.bf16.mxu0 %v2976_v17  ;;  %1482 = vmatprep.mubr.bf16.mxu1 %v2976_v17 }
 0x648   :  { %1412 = vmatpush1.bf16.msra.mxu0 %v2514_v31  ;;  %1453 = vmatpush1.bf16.msra.mxu1 %v2517_v33 }
 0x649   :  { %1413 = vmatprep.subr.bf16.mxu0 %v2519_v35  ;;  %1454 = vmatprep.subr.bf16.mxu1 %v2521_v36 }
 0x64c   :  { %1414 = vmatpush1.bf16.msra.mxu0 %v2526_v38  ;;  %1455 = vmatpush1.bf16.msra.mxu1 %v2529_v39 }
 0x64d   :  { %1415 = vmatprep.subr.bf16.mxu0 %v2531_v41  ;;  %1456 = vmatprep.subr.bf16.mxu1 %v2533_v43 }
 0x650   :  { %1416 = vmatpush1.bf16.msra.mxu0 %v2538_v44  ;;  %1457 = vmatpush1.bf16.msra.mxu1 %v2541_v45 }
 0x651   :  { %1417 = vmatprep.subr.bf16.mxu0 %v2543_v47  ;;  %1458 = vmatprep.subr.bf16.mxu1 %v2545_v49 }
 0x654   :  { %1418 = vmatpush1.bf16.msra.mxu0 %v2550_v51  ;;  %1459 = vmatpush1.bf16.msra.mxu1 %v2553_v53 }
 0x655   :  { %1419 = vmatprep.subr.bf16.mxu0 %v2555_v55  ;;  %1460 = vmatprep.subr.bf16.mxu1 %v2557_v57 }
 0x658   :  { %1420 = vmatpush1.bf16.msra.mxu0 %v2562_v60  ;;  %1461 = vmatpush1.bf16.msra.mxu1 %v2565_v62 }
 0x659   :  { %1421 = vmatprep.subr.bf16.mxu0 %v2567_v0  ;;  %1462 = vmatprep.subr.bf16.mxu1 %v2569_v2 }
 0x65c   :  { %1422 = vmatpush1.bf16.msra.mxu0 %v2574_v4  ;;  %1463 = vmatpush1.bf16.msra.mxu1 %v2577_v6 }
 0x65d   :  { %1423 = vmatprep.subr.bf16.mxu0 %v2579_v8  ;;  %1464 = vmatprep.subr.bf16.mxu1 %v2581_v11 }
 0x660   :  { %1424 = vmatpush1.bf16.msra.mxu0 %v2586_v15  ;;  %1465 = vmatpush1.bf16.msra.mxu1 %v2589_v58 }
 0x661   :  { %1515 = vmatprep.subr.bf16.mxu0 %v2497_v19  ;;  %1556 = vmatprep.subr.bf16.mxu1 %v2501_v23 }
 0x716   :  { %v1337_v26 = vpop.f32.mrb[32].mxu0  ;;  %v1378_v37 = vpop.f32.mrb[48].mxu1 }
 0x717   :  { %v1385_v61 = vadd.f32 %v1337_v26, %v2979_v12  ;;  %v1339_v63 = vpop.f32.mrb[33].mxu0  ;;  %v1380_v1 = vpop.f32.mrb[49].mxu1  ;;  %v1387_v42 = vadd.f32 %v1378_v37, %v2981_v13 }
 0x718   :  { %v1386_v7 = vadd.f32 %v1339_v63, %v2980_v5  ;;  %v1341_v9 = vpop.f32.mrb[34].mxu0  ;;  %v1382_v10 = vpop.f32.mrb[50].mxu1  ;;  %v1388_v14 = vadd.f32 %v1380_v1, %v2982_v30 }
 0x719   :  { %2045 = vtanh.f32 %v1385_v61  ;;  %v1342_v46 = vpop.f32.mrb[35].mxu0  ;;  %v1383_v32 = vpop.f32.mrb[51].mxu1  ;;  %v2983_v61 = vld [vmem:[#allocation9_spill] sm:$0xff] }
 0x71a   :  { %2047 = vtanh.f32 %v1386_v7  ;;  %v2984_v7 = vld [vmem:[#allocation10_spill] sm:$0xff] }
 0x71b   :  { %2049 = vtanh.f32 %v1387_v42  ;;  %v2985_v42 = vld [vmem:[#allocation19_spill] sm:$0xff] }
 0x71c   :  { %2051 = vtanh.f32 %v1388_v14 }
 0x723   :  { %v2046_v34 = vpop.eup %2045 }
 0x724   :  { %v1393_v40 = vmul.f32 0.5, %v2046_v34  ;;  %v2048_v18 = vpop.eup %2047 }
 0x725   :  { %v1395_v16 = vmul.f32 0.5, %v2048_v18  ;;  %v2050_v3 = vpop.eup %2049 }
 0x726   :  { %v1394_v22 = vadd.f32 0.5, %v1393_v40  ;;  %v2052_v48 = vpop.eup %2051 }
 0x727   :  { %v1396_v24 = vadd.f32 0.5, %v1395_v16  ;;  %v1397_v52 = vmul.f32 0.5, %v2052_v48 }
 0x728   :  { %v1400_v20 = vmul.f32 %v2050_v3, %v1394_v22 }
 0x729   :  { %v1399_v54 = vmul.f32 %v1396_v24, %v2761_v50  ;;  %v1398_v56 = vadd.f32 0.5, %v1397_v52 }
 0x72b   :  { %v2803_v28 = vadd.f32 %v1400_v20, %v1399_v54 }
 0x72d   :  { %2053 = vtanh.f32 %v2803_v28 }
 0x737   :  { %v2054_v59 = vpop.eup %2053 }
 0x738   :  { %v1403_v26 = vmul.f32 %v2054_v59, %v1398_v56 }
 0x73a   :  { %v1408_v37 = vpack.c.bf16 %v1403_v26, %v1403_v26 }
 0x73c   :  { %1442 = vmatmul.mubr.bf16.vlgmr.msra.gmra.mrb[36].mxu0 %v1408_v37  ;;  %1483 = vmatmul.mubr.bf16.vlgmr.msra.gmra.mrb[52].mxu1 %v1408_v37 }
 0x73d   :  { %1516 = vmatpush1.bf16.msra.mxu0 %v2499_v21  ;;  %1557 = vmatpush1.bf16.msra.mxu1 %v2505_v25 }
 0x73e   :  { %1517 = vmatprep.subr.bf16.mxu0 %v2507_v27  ;;  %1558 = vmatprep.subr.bf16.mxu1 %v2511_v29 }
 0x73f   :  { %1547 = vmatprep.mubr.bf16.mxu0 %v2976_v17  ;;  %1588 = vmatprep.mubr.bf16.mxu1 %v2976_v17 }
 0x741   :  { %1518 = vmatpush1.bf16.msra.mxu0 %v2514_v31  ;;  %1559 = vmatpush1.bf16.msra.mxu1 %v2517_v33 }
 0x742   :  { %1519 = vmatprep.subr.bf16.mxu0 %v2519_v35  ;;  %1560 = vmatprep.subr.bf16.mxu1 %v2521_v36 }
 0x745   :  { %1520 = vmatpush1.bf16.msra.mxu0 %v2526_v38  ;;  %1561 = vmatpush1.bf16.msra.mxu1 %v2529_v39 }
 0x746   :  { %1521 = vmatprep.subr.bf16.mxu0 %v2531_v41  ;;  %1562 = vmatprep.subr.bf16.mxu1 %v2533_v43 }
 0x749   :  { %1522 = vmatpush1.bf16.msra.mxu0 %v2538_v44  ;;  %1563 = vmatpush1.bf16.msra.mxu1 %v2541_v45 }
 0x74a   :  { %1523 = vmatprep.subr.bf16.mxu0 %v2543_v47  ;;  %1564 = vmatprep.subr.bf16.mxu1 %v2545_v49 }
 0x74d   :  { %1524 = vmatpush1.bf16.msra.mxu0 %v2550_v51  ;;  %1565 = vmatpush1.bf16.msra.mxu1 %v2553_v53 }
 0x74e   :  { %1525 = vmatprep.subr.bf16.mxu0 %v2555_v55  ;;  %1566 = vmatprep.subr.bf16.mxu1 %v2557_v57 }
 0x751   :  { %1526 = vmatpush1.bf16.msra.mxu0 %v2562_v60  ;;  %1567 = vmatpush1.bf16.msra.mxu1 %v2565_v62 }
 0x752   :  { %1527 = vmatprep.subr.bf16.mxu0 %v2567_v0  ;;  %1568 = vmatprep.subr.bf16.mxu1 %v2569_v2 }
 0x755   :  { %1528 = vmatpush1.bf16.msra.mxu0 %v2574_v4  ;;  %1569 = vmatpush1.bf16.msra.mxu1 %v2577_v6 }
 0x756   :  { %1529 = vmatprep.subr.bf16.mxu0 %v2579_v8  ;;  %1570 = vmatprep.subr.bf16.mxu1 %v2581_v11 }
 0x759   :  { %1530 = vmatpush1.bf16.msra.mxu0 %v2586_v15  ;;  %1571 = vmatpush1.bf16.msra.mxu1 %v2589_v58 }
 0x75a   :  { %1621 = vmatprep.subr.bf16.mxu0 %v2497_v19  ;;  %1662 = vmatprep.subr.bf16.mxu1 %v2501_v23  ;;  %v2986_v19 = vld [vmem:[#allocation20_spill] sm:$0xff] }
 0x80f   :  { %v1443_v50 = vpop.f32.mrb[36].mxu0  ;;  %v1484_v12 = vpop.f32.mrb[52].mxu1 }
 0x810   :  { %v1491_v63 = vadd.f32 %v1443_v50, %v2983_v61  ;;  %v1445_v1 = vpop.f32.mrb[37].mxu0  ;;  %v1486_v5 = vpop.f32.mrb[53].mxu1  ;;  %v1493_v46 = vadd.f32 %v1484_v12, %v2985_v42  ;;  %v1722_v50 = vld [vmem:[%s2953_s6] sm:$0xff]  ;;  %v1723_v12 = vld [vmem:[%s2953_s6 + $0x8] sm:$0xff]  ;;  %v1728_v42 = vld [vmem:[%s2953_s6 + $0x30] sm:$0xff] }
 0x811   :  { %v1492_v9 = vadd.f32 %v1445_v1, %v2984_v7  ;;  %v1447_v10 = vpop.f32.mrb[38].mxu0  ;;  %v1488_v13 = vpop.f32.mrb[54].mxu1  ;;  %v1494_v14 = vadd.f32 %v1486_v5, %v2986_v19  ;;  %v1940_v61 = vpack.c.bf16 %v1723_v12, %v1722_v50  ;;  %v1724_v1 = vld [vmem:[%s2953_s6 + $0x10] sm:$0xff]  ;;  %v1725_v5 = vld [vmem:[%s2953_s6 + $0x18] sm:$0xff]  ;;  %v1731_v19 = vld [vmem:[%s2953_s6 + $0x48] sm:$0xff] }
 0x812   :  { %2055 = vtanh.f32 %v1491_v63  ;;  %v1448_v32 = vpop.f32.mrb[39].mxu0  ;;  %v1489_v30 = vpop.f32.mrb[55].mxu1  ;;  %v2088_v63 = vmov 0.0|0.0   ;;  %v1943_v7 = vpack.c.bf16 %v1725_v5, %v1724_v1  ;;  %v1727_v10 = vld [vmem:[%s2953_s6 + $0x28] sm:$0xff] }
 0x813   :  { %2057 = vtanh.f32 %v1492_v9  ;;  %v1726_v9 = vld [vmem:[%s2953_s6 + $0x20] sm:$0xff] }
 0x814   :  { %2059 = vtanh.f32 %v1493_v46  ;;  %v1946_v13 = vpack.c.bf16 %v1727_v10, %v1726_v9  ;;  %v1729_v46 = vld [vmem:[%s2953_s6 + $0x38] sm:$0xff]  ;;  %v1730_v30 = vld [vmem:[%s2953_s6 + $0x40] sm:$0xff] }
 0x815   :  { %2061 = vtanh.f32 %v1494_v14  ;;  %v1949_v32 = vpack.c.bf16 %v1729_v46, %v1728_v42  ;;  %v1952_v14 = vpack.c.bf16 %v1731_v19, %v1730_v30 }
 0x81c   :  { %v2056_v23 = vpop.eup %2055 }
 0x81d   :  { %v1499_v34 = vmul.f32 0.5, %v2056_v23  ;;  %v2058_v40 = vpop.eup %2057  ;;  %v1732_v23 = vld [vmem:[%s2953_s6 + $0x50] sm:$0xff] }
 0x81e   :  { %v1501_v22 = vmul.f32 0.5, %v2058_v40  ;;  %v2060_v16 = vpop.eup %2059 }
 0x81f   :  { %v1500_v18 = vadd.f32 0.5, %v1499_v34  ;;  %v2062_v48 = vpop.eup %2061  ;;  %v1733_v34 = vld [vmem:[%s2953_s6 + $0x58] sm:$0xff] }
 0x820   :  { %v1502_v3 = vadd.f32 0.5, %v1501_v22  ;;  %v1503_v52 = vmul.f32 0.5, %v2062_v48  ;;  %v1955_v40 = vpack.c.bf16 %v1733_v34, %v1732_v23  ;;  %v1735_v22 = vld [vmem:[%s2953_s6 + $0x68] sm:$0xff] }
 0x821   :  { %v1506_v24 = vmul.f32 %v2060_v16, %v1500_v18  ;;  %v1734_v18 = vld [vmem:[%s2953_s6 + $0x60] sm:$0xff] }
 0x822   :  { %v1505_v20 = vmul.f32 %v1502_v3, %v2803_v28  ;;  %v1504_v56 = vadd.f32 0.5, %v1503_v52  ;;  %v1958_v16 = vpack.c.bf16 %v1735_v22, %v1734_v18  ;;  %v1736_v3 = vld [vmem:[%s2953_s6 + $0x70] sm:$0xff] }
 0x824   :  { %v2845_v54 = vadd.f32 %v1506_v24, %v1505_v20  ;;  %v1737_v24 = vld [vmem:[%s2953_s6 + $0x78] sm:$0xff] }
 0x825   :  { %v1961_v20 = vpack.c.bf16 %v1737_v24, %v1736_v3 }
 0x826   :  { %2063 = vtanh.f32 %v2845_v54 }
 0x830   :  { %v2064_v59 = vpop.eup %2063 }
 0x831   :  { %v1509_v26 = vmul.f32 %v2064_v59, %v1504_v56  ;;  %v2991_v56 = vld [vmem:[#allocation13_spill] sm:$0xff] }
 0x833   :  { %v1514_v37 = vpack.c.bf16 %v1509_v26, %v1509_v26 }
 0x835   :  { %1548 = vmatmul.mubr.bf16.vlgmr.msra.gmra.mrb[40].mxu0 %v1514_v37  ;;  %1589 = vmatmul.mubr.bf16.vlgmr.msra.gmra.mrb[56].mxu1 %v1514_v37 }
 0x836   :  { %1622 = vmatpush1.bf16.msra.mxu0 %v2499_v21  ;;  %1663 = vmatpush1.bf16.msra.mxu1 %v2505_v25  ;;  %v2987_v25 = vld [vmem:[#allocation11_spill] sm:$0xff] }
 0x837   :  { %1623 = vmatprep.subr.bf16.mxu0 %v2507_v27  ;;  %1664 = vmatprep.subr.bf16.mxu1 %v2511_v29 }
 0x838   :  { %1653 = vmatprep.mubr.bf16.mxu0 %v2976_v17  ;;  %1694 = vmatprep.mubr.bf16.mxu1 %v2976_v17 }
 0x83a   :  { %1624 = vmatpush1.bf16.msra.mxu0 %v2514_v31  ;;  %1665 = vmatpush1.bf16.msra.mxu1 %v2517_v33  ;;  %v2988_v33 = vld [vmem:[#allocation12_spill] sm:$0xff] }
 0x83b   :  { %1625 = vmatprep.subr.bf16.mxu0 %v2519_v35  ;;  %1666 = vmatprep.subr.bf16.mxu1 %v2521_v36 }
 0x83e   :  { %1626 = vmatpush1.bf16.msra.mxu0 %v2526_v38  ;;  %1667 = vmatpush1.bf16.msra.mxu1 %v2529_v39  ;;  %v2989_v39 = vld [vmem:[#allocation21_spill] sm:$0xff] }
 0x83f   :  { %1627 = vmatprep.subr.bf16.mxu0 %v2531_v41  ;;  %1668 = vmatprep.subr.bf16.mxu1 %v2533_v43 }
 0x842   :  { %1628 = vmatpush1.bf16.msra.mxu0 %v2538_v44  ;;  %1669 = vmatpush1.bf16.msra.mxu1 %v2541_v45  ;;  %v2990_v45 = vld [vmem:[#allocation22_spill] sm:$0xff] }
 0x843   :  { %1629 = vmatprep.subr.bf16.mxu0 %v2543_v47  ;;  %1670 = vmatprep.subr.bf16.mxu1 %v2545_v49 }
 0x846   :  { %1630 = vmatpush1.bf16.msra.mxu0 %v2550_v51  ;;  %1671 = vmatpush1.bf16.msra.mxu1 %v2553_v53 }
 0x847   :  { %1631 = vmatprep.subr.bf16.mxu0 %v2555_v55  ;;  %1672 = vmatprep.subr.bf16.mxu1 %v2557_v57 }
 0x84a   :  { %1632 = vmatpush1.bf16.msra.mxu0 %v2562_v60  ;;  %1673 = vmatpush1.bf16.msra.mxu1 %v2565_v62 }
 0x84b   :  { %1633 = vmatprep.subr.bf16.mxu0 %v2567_v0  ;;  %1674 = vmatprep.subr.bf16.mxu1 %v2569_v2 }
 0x84e   :  { %1634 = vmatpush1.bf16.msra.mxu0 %v2574_v4  ;;  %1675 = vmatpush1.bf16.msra.mxu1 %v2577_v6 }
 0x84f   :  { %1635 = vmatprep.subr.bf16.mxu0 %v2579_v8  ;;  %1676 = vmatprep.subr.bf16.mxu1 %v2581_v11 }
 0x852   :  { %1636 = vmatpush1.bf16.msra.mxu0 %v2586_v15  ;;  %1677 = vmatpush1.bf16.msra.mxu1 %v2589_v58 }
 0x853   :  { %1939 = vmatprep.subr.bf16.mxu0 %v2088_v63 }
 0x908   :  { %v1549_v17 = vpop.f32.mrb[40].mxu0  ;;  %v1590_v21 = vpop.f32.mrb[56].mxu1 }
 0x909   :  { %v1597_v27 = vadd.f32 %v1549_v17, %v2987_v25  ;;  %v1551_v29 = vpop.f32.mrb[41].mxu0  ;;  %v1592_v31 = vpop.f32.mrb[57].mxu1  ;;  %v1599_v41 = vadd.f32 %v1590_v21, %v2989_v39  ;;  %v2992_v17 = vld [vmem:[#allocation14_spill] sm:$0xff] }
 0x90a   :  { %v1598_v35 = vadd.f32 %v1551_v29, %v2988_v33  ;;  %v1553_v36 = vpop.f32.mrb[42].mxu0  ;;  %v1594_v38 = vpop.f32.mrb[58].mxu1  ;;  %v1600_v47 = vadd.f32 %v1592_v31, %v2990_v45  ;;  %v2993_v29 = vld [vmem:[#allocation23_spill] sm:$0xff] }
 0x90b   :  { %2065 = vtanh.f32 %v1597_v27  ;;  %v1554_v43 = vpop.f32.mrb[43].mxu0  ;;  %v1595_v44 = vpop.f32.mrb[59].mxu1  ;;  %v2994_v36 = vld [vmem:[#allocation24_spill] sm:$0xff] }
 0x90c   :  { %2067 = vtanh.f32 %v1598_v35 }
 0x90d   :  { %2069 = vtanh.f32 %v1599_v41 }
 0x90e   :  { %2071 = vtanh.f32 %v1600_v47 }
 0x915   :  { %v2066_v58 = vpop.eup %2065 }
 0x916   :  { %v1605_v49 = vmul.f32 0.5, %v2066_v58  ;;  %v2068_v51 = vpop.eup %2067 }
 0x917   :  { %v1607_v55 = vmul.f32 0.5, %v2068_v51  ;;  %v2070_v57 = vpop.eup %2069 }
 0x918   :  { %v1606_v53 = vadd.f32 0.5, %v1605_v49  ;;  %v2072_v4 = vpop.eup %2071 }
 0x919   :  { %v1608_v60 = vadd.f32 0.5, %v1607_v55  ;;  %v1609_v6 = vmul.f32 0.5, %v2072_v4  ;;  %v1885_v4 = vld [vmem:[%s2954_s7] ss:$0 sm:$0xff] }
 0x91a   :  { %v1612_v62 = vmul.f32 %v2070_v57, %v1606_v53 }
 0x91b   :  { %v1611_v0 = vmul.f32 %v1608_v60, %v2845_v54  ;;  %v1610_v8 = vadd.f32 0.5, %v1609_v6  ;;  %v2090_v54 = vmov 0.0  }
 0x91d   :  { %v2885_v2 = vadd.f32 %v1612_v62, %v1611_v0 }
 0x91f   :  { %2073 = vtanh.f32 %v2885_v2 }
 0x929   :  { %v2074_v11 = vpop.eup %2073 }
 0x92a   :  { %v1615_v15 = vmul.f32 %v2074_v11, %v1610_v8 }
 0x92c   :  { %v1620_v28 = vpack.c.bf16 %v1615_v15, %v1615_v15 }
 0x92e   :  { %1654 = vmatmul.mubr.bf16.vlgmr.msra.gmra.mrb[44].mxu0 %v1620_v28  ;;  %1695 = vmatmul.mubr.bf16.vlgmr.msra.gmra.mrb[60].mxu1 %v1620_v28 }
 0x92f   :  { %1941 = vmatpush3.bf16.msra.mxu0 %v1940_v61  ;;  %1936 = vmatprep.mubr.msk.f32.mxu0 %vm2089_vm3, %v2090_v54 }
 0x930   :  { %1942 = vmatprep.subr.bf16.mxu0 %v2088_v63 }
 0x933   :  { %1944 = vmatpush3.bf16.msra.mxu0 %v1943_v7 }
 0x934   :  { %1945 = vmatprep.subr.bf16.mxu0 %v2088_v63 }
 0x937   :  { %1947 = vmatpush3.bf16.msra.mxu0 %v1946_v13 }
 0x938   :  { %1948 = vmatprep.subr.bf16.mxu0 %v2088_v63 }
 0x93b   :  { %1950 = vmatpush3.bf16.msra.mxu0 %v1949_v32 }
 0x93c   :  { %1951 = vmatprep.subr.bf16.mxu0 %v2088_v63 }
 0x93f   :  { %1953 = vmatpush3.bf16.msra.mxu0 %v1952_v14 }
 0x940   :  { %1954 = vmatprep.subr.bf16.mxu0 %v2088_v63 }
 0x943   :  { %1956 = vmatpush3.bf16.msra.mxu0 %v1955_v40 }
 0x944   :  { %1957 = vmatprep.subr.bf16.mxu0 %v2088_v63 }
 0x947   :  { %1959 = vmatpush3.bf16.msra.mxu0 %v1958_v16 }
 0x948   :  { %1960 = vmatprep.subr.bf16.mxu0 %v2088_v63 }
 0x94b   :  { %1962 = vmatpush3.bf16.msra.mxu0 %v1961_v20 }
 0xa01   :  { %v1655_v48 = vpop.f32.mrb[44].mxu0  ;;  %v1696_v52 = vpop.f32.mrb[60].mxu1 }
 0xa02   :  { %v1703_v59 = vadd.f32 %v1655_v48, %v2991_v56  ;;  %v1657_v26 = vpop.f32.mrb[45].mxu0  ;;  %v1698_v37 = vpop.f32.mrb[61].mxu1  ;;  %v1705_v31 = vadd.f32 %v1696_v52, %v2993_v29 }
 0xa03   :  { %v1704_v21 = vadd.f32 %v1657_v26, %v2992_v17  ;;  %v1659_v25 = vpop.f32.mrb[46].mxu0  ;;  %v1700_v27 = vpop.f32.mrb[62].mxu1  ;;  %v1706_v38 = vadd.f32 %v1698_v37, %v2994_v36 }
 0xa04   :  { %2075 = vtanh.f32 %v1703_v59  ;;  %v1660_v33 = vpop.f32.mrb[47].mxu0  ;;  %v1701_v35 = vpop.f32.mrb[63].mxu1 }
 0xa05   :  { %2077 = vtanh.f32 %v1704_v21 }
 0xa06   :  { %2079 = vtanh.f32 %v1705_v31 }
 0xa07   :  { %2081 = vtanh.f32 %v1706_v38 }
 0xa0e   :  { %v2076_v39 = vpop.eup %2075 }
 0xa0f   :  { %v1711_v41 = vmul.f32 0.5, %v2076_v39  ;;  %v2078_v43 = vpop.eup %2077 }
 0xa10   :  { %v1713_v45 = vmul.f32 0.5, %v2078_v43  ;;  %v2080_v47 = vpop.eup %2079 }
 0xa11   :  { %v1712_v44 = vadd.f32 0.5, %v1711_v41  ;;  %v2082_v55 = vpop.eup %2081 }
 0xa12   :  { %v1714_v58 = vadd.f32 0.5, %v1713_v45  ;;  %v1715_v57 = vmul.f32 0.5, %v2082_v55 }
 0xa13   :  { %v1718_v49 = vmul.f32 %v2080_v47, %v1712_v44 }
 0xa14   :  { %v1717_v51 = vmul.f32 %v1714_v58, %v2885_v2  ;;  %v1716_v60 = vadd.f32 0.5, %v1715_v57 }
 0xa16   :  { %v1719_v53 = vadd.f32 %v1718_v49, %v1717_v51 }
 0xa18   :  { %2083 = vtanh.f32 %v1719_v53 }
 0xa22   :  { %v2084_v62 = vpop.eup %2083 }
 0xa23   :  { %v1721_v0 = vmul.f32 %v2084_v62, %v1716_v60 }
 0xa25   :  { %1937 = vmatmul.mubr.f32.vlgmr.msra.gmra.mrb[48].mxu0 %v1721_v0 }
 0xaf8   :  { %v1811_v6 = vpop.f32.mrb[48].mxu0 }
 0xaf9   :  { %v1812_v8 = vadd.f32 %v1885_v4, %v1811_v6  ;;  %v1938_v11 = vpop.f32.mrb[49].mxu0 }
 0xafb   :  { %1815 = vst [vmem:[%s2955_s8] sm:$0xff] %v1812_v8 }
 0xafc   :  { %1820 = vsyncmov [#allocation4] }
 0xaff   :  { %s1821_s23 = vpop.sfrf %1820 }
 0xb00   :  { %p1886_p0 = scmp.ne.s32.totalorder %s1821_s23, 0 }
 0xb02   :  { %1825 = shalt.err (%p1886_p0)  }

</bundles_post_ra>
